<compile_context>
chip_gen: v7x
topology: tpu7x:2x2x1
jax: 0.10.0
libtpu: 0.0.40
codegen_flags: <defaults>
</compile_context>

<pallas_src>
import math

import jax
import jax.numpy as jnp
from jax import lax
from jax.experimental import pallas as pl
from jax.experimental.pallas import tpu as pltpu

# ----------------------------- config (small, deterministic) -----------------------------
BATCH = 2
SEQ = 16
EMBED = 64
HIDDEN = 128
NUM_HEADS = 4
NUM_KV_HEADS = 2
HEAD_DIM = EMBED // NUM_HEADS            # 16
KV_DIM = NUM_KV_HEADS * HEAD_DIM         # 32
REPEAT = EMBED // KV_DIM                 # 2
QKV_DIM = EMBED + 2 * KV_DIM             # 128
IN_BIG = 256                             # q|k|v|rot(q)|rot(k) = 224, zero-padded to 256 lanes
GU_DIM = 2 * HIDDEN                      # fused gate|up = 256
EPS = 1e-5
WINDOW = 8
ROPE_THETA = 10000.0

_DN = (((1,), (1,)), ((), ()))           # contract x's last dim with W's dim 1 (x @ W.T)


# ----------------------------------- fused Pallas kernel ---------------------------------
def _make_kernel(bb):
    """bb = batch elements processed per grid step (1 on v7x, B on single-TC chips)."""
    HALF = SEQ // 2

    def kernel(x_ref, w_in_ref, w_o_ref, w_gu_ref, w_down_ref,
               cosq_ref, sinq_ref, cosk_ref, sink_ref, o_ref):
        f32 = jnp.float32

        # ---- unpack lane-dense (bb, S/2, 2E) input into (bb*S, E) token rows ----
        xp = x_ref[...].astype(f32)                                    # (bb, 8, 128)
        rows = [jnp.concatenate([xp[b, :, :EMBED], xp[b, :, EMBED:]], axis=0)
                for b in range(bb)]                                    # each (S, E)
        x = rows[0] if bb == 1 else jnp.concatenate(rows, axis=0)      # (bb*S, E)

        # ---- RMSNorm (attn); gain already folded into W_in columns ----
        xn = x * lax.rsqrt(jnp.mean(x * x, axis=-1, keepdims=True) + EPS)

        # ---- fused in_proj: [q | k | v | rot(q) | rot(k) | pad], one 256-wide matmul ----
        qkvr = lax.dot_general(xn, w_in_ref[...], _DN, preferred_element_type=f32)
        q = qkvr[:, :EMBED]
        k = qkvr[:, EMBED:EMBED + KV_DIM]
        v = qkvr[:, EMBED + KV_DIM:QKV_DIM]
        rq = qkvr[:, QKV_DIM:QKV_DIM + EMBED]
        rk = qkvr[:, QKV_DIM + EMBED:QKV_DIM + EMBED + KV_DIM]

        # ---- RoPE, pure elementwise (1/sqrt(D) softmax scale folded into q tables) ----
        q_rot = q * cosq_ref[...] + rq * sinq_ref[...]
        k_rot = k * cosk_ref[...] + rk * sink_ref[...]

        # ---- sliding-window causal additive bias, computed on the VPU (no DMA) ----
        qi = lax.broadcasted_iota(jnp.int32, (SEQ, SEQ), 0)
        ki = lax.broadcasted_iota(jnp.int32, (SEQ, SEQ), 1)
        allowed = (qi >= ki) & ((qi - ki) <= WINDOW)
        bias = jnp.where(allowed, 0.0, -1e30).astype(f32)              # (S, S)
        bias_h = jnp.concatenate([bias] * NUM_HEADS, axis=0)           # (H*S, S)

        w_o = w_o_ref[...].astype(f32)                                 # (E, E)

        attn_rows = []
        for b in range(bb):
            r0 = b * SEQ
            qb = q_rot[r0:r0 + SEQ]
            kb = k_rot[r0:r0 + SEQ]
            vb = v[r0:r0 + SEQ]

            # all-head scores stacked along sublanes -> one softmax pass
            s_list = []
            for h in range(NUM_HEADS):
                g = h // REPEAT                                        # GQA head -> KV group
                qh = qb[:, h * HEAD_DIM:(h + 1) * HEAD_DIM]
                kh = kb[:, g * HEAD_DIM:(g + 1) * HEAD_DIM]
                s_list.append(lax.dot_general(qh, kh, _DN, preferred_element_type=f32))
            s_all = jnp.concatenate(s_list, axis=0) + bias_h           # (H*S, S)
            m = jnp.max(s_all, axis=-1, keepdims=True)
            p = jnp.exp(s_all - m)
            p = p * pl.reciprocal(jnp.sum(p, axis=-1, keepdims=True), approx=True)

            # per-KV-group PV, then per-head o_proj accumulation (no lane concat)
            acc = jnp.zeros((SEQ, EMBED), f32)
            for g in range(NUM_KV_HEADS):
                vg = vb[:, g * HEAD_DIM:(g + 1) * HEAD_DIM]
                pg = p[g * REPEAT * SEQ:(g + 1) * REPEAT * SEQ]        # (REPEAT*S, S)
                og = jnp.dot(pg, vg, preferred_element_type=f32)       # (REPEAT*S, D)
                for r in range(REPEAT):
                    h = g * REPEAT + r
                    oh = og[r * SEQ:(r + 1) * SEQ]                     # (S, D) sublane slice
                    wo_h = w_o[:, h * HEAD_DIM:(h + 1) * HEAD_DIM]     # (E, D)
                    acc = acc + lax.dot_general(oh, wo_h, _DN, preferred_element_type=f32)
            attn_rows.append(acc)
        o_attn = attn_rows[0] if bb == 1 else jnp.concatenate(attn_rows, axis=0)

        # ---- residual + RMSNorm (ffn, gain folded) + fused gate|up SwiGLU + residual ----
        h1 = x + o_attn
        hn = h1 * lax.rsqrt(jnp.mean(h1 * h1, axis=-1, keepdims=True) + EPS)
        gu = lax.dot_general(hn, w_gu_ref[...], _DN, preferred_element_type=f32)  # (R, 256)
        gp, up = gu[:, :HIDDEN], gu[:, HIDDEN:]
        act = gp * jax.nn.sigmoid(gp) * up
        ffn = lax.dot_general(act, w_down_ref[...], _DN, preferred_element_type=f32)
        out = (h1 + ffn).astype(o_ref.dtype)                           # (bb*S, E)

        # ---- repack to the lane-dense (bb, S/2, 2E) output slab (full-vreg stores) ----
        for b in range(bb):
            ob = out[b * SEQ:(b + 1) * SEQ]
            o_ref[b] = jnp.concatenate([ob[:HALF], ob[HALF:]], axis=1)  # (8, 128)

    return kernel


# ----------------------------- offline weight folding (once) -----------------------------
def _pair_swap(n):
    # (x @ P)[2i] = -x[2i+1], (x @ P)[2i+1] = x[2i]
    r = jnp.arange(n)[:, None]
    c = jnp.arange(n)[None, :]
    plus = ((r % 2 == 0) & (c == r + 1)).astype(jnp.float32)
    minus = ((r % 2 == 1) & (c == r - 1)).astype(jnp.float32)
    return plus - minus


def fold_params(params):
    f32 = jnp.float32
    w_in = params["w_in"].astype(f32)                     # (QKV_DIM, E), PyTorch (out, in)
    w_q, w_k = w_in[:EMBED], w_in[EMBED:EMBED + KV_DIM]
    w_rq = _pair_swap(EMBED).T @ w_q                      # rot(q) = xn @ (P^T W_q)^T
    w_rk = _pair_swap(KV_DIM).T @ w_k
    pad = jnp.zeros((IN_BIG - (QKV_DIM + EMBED + KV_DIM), EMBED), f32)
    w_in_big = jnp.concatenate([w_in, w_rq, w_rk, pad], axis=0)        # (256, E)
    w_in_big = w_in_big * params["attn_norm_w"].astype(f32)[None, :]   # fold attn RMSNorm gain

    w_gu = jnp.concatenate([params["w_gate"], params["w_up"]], axis=0).astype(f32)  # (256, E)
    w_gu = w_gu * params["ffn_norm_w"].astype(f32)[None, :]            # fold ffn RMSNorm gain

    return {"w_in_big": w_in_big, "w_o": params["w_o"].astype(f32),
            "w_gu": w_gu, "w_down": params["w_down"].astype(f32)}


# ------------------------------------ module forward -------------------------------------
def _batch_per_step(batch):
    # v7x: 2 TensorCores/chip -> one batch element per "parallel" grid step.
    # Single-TC v5e/v6e: merge the whole batch into one step (no per-step grid overhead).
    try:
        kind = jax.devices()[0].device_kind.lower()
    except Exception:
        kind = ""
    return 1 if ("v7" in kind or "7x" in kind) else batch


def _pack_rows(a):      # (B, S, E) -> (B, S/2, 2E): row r holds tokens r and r + S/2
    return jnp.concatenate([a[:, :SEQ // 2, :], a[:, SEQ // 2:, :]], axis=-1)


def _unpack_rows(a):    # (B, S/2, 2E) -> (B, S, E)
    return jnp.concatenate([a[..., :EMBED], a[..., EMBED:]], axis=1)


def mistral_block_forward(folded, x, cos, sin, bb=None):
    B, S, E = x.shape
    assert (S, E) == (SEQ, EMBED)
    if bb is None:
        bb = _batch_per_step(B)
    bb = max(1, min(bb, B))
    assert B % bb == 0
    f32 = jnp.float32
    scale = 1.0 / math.sqrt(HEAD_DIM)

    # Interleaved-expanded RoPE tables tiled per head and per in-step batch row; fold the
    # softmax 1/sqrt(D) scale into the q tables (free).
    cos_i = jnp.repeat(cos.astype(f32), 2, axis=-1)                    # (S, D)
    sin_i = jnp.repeat(sin.astype(f32), 2, axis=-1)
    cos_q = jnp.tile(cos_i, (bb, NUM_HEADS)) * scale                   # (bb*S, E)
    sin_q = jnp.tile(sin_i, (bb, NUM_HEADS)) * scale
    cos_k = jnp.tile(cos_i, (bb, NUM_KV_HEADS))                        # (bb*S, KV_DIM)
    sin_k = jnp.tile(sin_i, (bb, NUM_KV_HEADS))

    x_p = _pack_rows(x)                                                # (B, 8, 128) lane-dense

    consts = (folded["w_in_big"], folded["w_o"], folded["w_gu"], folded["w_down"],
              cos_q, sin_q, cos_k, sin_k)

    in_specs = [pl.BlockSpec((bb, SEQ // 2, 2 * EMBED), lambda i: (i, 0, 0))]
    in_specs += [pl.BlockSpec(a.shape, lambda i: (0, 0)) for a in consts]

    out_p = pl.pallas_call(
        _make_kernel(bb),
        out_shape=jax.ShapeDtypeStruct((B, SEQ // 2, 2 * EMBED), x.dtype),
        grid=(B // bb,),
        in_specs=in_specs,
        out_specs=pl.BlockSpec((bb, SEQ // 2, 2 * EMBED), lambda i: (i, 0, 0)),
        compiler_params=pltpu.CompilerParams(dimension_semantics=("parallel",)),
    )(x_p, *consts)

    return _unpack_rows(out_p)


# ------------------------------- pure-JAX reference (check) ------------------------------
def reference_forward(params, x, cos, sin):
    def rms(y, w):
        ms = jnp.mean(y * y, axis=-1, keepdims=True)
        return (y * lax.rsqrt(ms + EPS)) * w

    def rope(y):
        ye, yo = y[..., 0::2], y[..., 1::2]
        oe = ye * cos - yo * sin
        oo = ye * sin + yo * cos
        return jnp.stack([oe, oo], axis=-1).reshape(y.shape)

    B, S, E = x.shape
    xn = rms(x, params["attn_norm_w"])
    qkv = xn @ params["w_in"].T
    q, k, v = qkv[..., :EMBED], qkv[..., EMBED:EMBED + KV_DIM], qkv[..., EMBED + KV_DIM:]
    q = q.reshape(B, S, NUM_HEADS, HEAD_DIM).transpose(0, 2, 1, 3)
    k = k.reshape(B, S, NUM_KV_HEADS, HEAD_DIM).transpose(0, 2, 1, 3)
    v = v.reshape(B, S, NUM_KV_HEADS, HEAD_DIM).transpose(0, 2, 1, 3)
    q, k = rope(q), rope(k)
    k = jnp.repeat(k, REPEAT, axis=1)
    v = jnp.repeat(v, REPEAT, axis=1)
    s = jnp.einsum("bhqd,bhkd->bhqk", q, k) / math.sqrt(HEAD_DIM)
    qi = jnp.arange(S)[:, None]
    ki = jnp.arange(S)[None, :]
    mask = (qi >= ki) & ((qi - ki) <= WINDOW)
    s = jnp.where(mask, s, -1e30)
    p = jax.nn.softmax(s, axis=-1)
    o = jnp.einsum("bhqk,bhkd->bhqd", p, v).transpose(0, 2, 1, 3).reshape(B, S, E)
    h = x + o @ params["w_o"].T
    hn = rms(h, params["ffn_norm_w"])
    g = hn @ params["w_gate"].T
    u = hn @ params["w_up"].T
    ffn = ((g * jax.nn.sigmoid(g)) * u) @ params["w_down"].T
    return h + ffn


# ------------------------------------------ main -----------------------------------------
def make_params(key):
    ks = jax.random.split(key, 8)
    std = 0.02
    return {
        "attn_norm_w": 1.0 + 0.1 * jax.random.normal(ks[0], (EMBED,), jnp.float32),
        "ffn_norm_w": 1.0 + 0.1 * jax.random.normal(ks[1], (EMBED,), jnp.float32),
        "w_in": std * jax.random.normal(ks[2], (QKV_DIM, EMBED), jnp.float32),
        "w_o": std * jax.random.normal(ks[3], (EMBED, EMBED), jnp.float32),
        "w_gate": std * jax.random.normal(ks[4], (HIDDEN, EMBED), jnp.float32),
        "w_up": std * jax.random.normal(ks[5], (HIDDEN, EMBED), jnp.float32),
        "w_down": std * jax.random.normal(ks[6], (EMBED, HIDDEN), jnp.float32),
    }


def make_freqs(seq_len, head_dim, theta=ROPE_THETA):
    inv = 1.0 / (theta ** (jnp.arange(0, head_dim, 2, dtype=jnp.float32) / head_dim))
    t = jnp.arange(seq_len, dtype=jnp.float32)
    ang = jnp.outer(t, inv)                       # (S, D/2)
    return jnp.cos(ang), jnp.sin(ang)             # freqs_cis = cos + i*sin


if __name__ == "__main__":
    key = jax.random.PRNGKey(0)
    k_param, k_x = jax.random.split(key)
    params = make_params(k_param)
    x = jax.random.normal(k_x, (BATCH, SEQ, EMBED), jnp.float32)
    cos, sin = make_freqs(SEQ, HEAD_DIM)

    folded = fold_params(params)                  # one-time offline fold (RoPE/norm/gate|up)

    fwd = jax.jit(mistral_block_forward)
    out = jax.block_until_ready(fwd(folded, x, cos, sin))

    ref = reference_forward(params, x, cos, sin)
    assert out.shape == (BATCH, SEQ, EMBED)
    assert jnp.allclose(out, ref, atol=1e-3, rtol=1e-3), float(jnp.max(jnp.abs(out - ref)))

    print("KERNEL_OK")
</pallas_src>

<mosaic_0001>
module attributes {stable_mosaic.version = 11 : i64} {
  func.func @kernel(%arg0: i32, %arg1: memref<2x8x128xf32, #tpu.memory_space<vmem>>, %arg2: memref<256x64xf32, #tpu.memory_space<vmem>>, %arg3: memref<64x64xf32, #tpu.memory_space<vmem>>, %arg4: memref<256x64xf32, #tpu.memory_space<vmem>>, %arg5: memref<64x128xf32, #tpu.memory_space<vmem>>, %arg6: memref<32x64xf32, #tpu.memory_space<vmem>>, %arg7: memref<32x64xf32, #tpu.memory_space<vmem>>, %arg8: memref<32x32xf32, #tpu.memory_space<vmem>>, %arg9: memref<32x32xf32, #tpu.memory_space<vmem>>, %arg10: memref<2x8x128xf32, #tpu.memory_space<vmem>>) attributes {dimension_semantics = [#tpu.dimension_semantics<parallel>], iteration_bounds = array<i64: 1>, scalar_prefetch = 0 : i64, scratch_operands = 0 : i64, tpu.core_type = #tpu.core_type<tc>, window_params = [{transform_indices = @transform_0, window_bounds = array<i64: 2, 8, 128>}, {pipeline_mode = #tpu.pipeline_mode<synchronous>, transform_indices = @transform_1, window_bounds = array<i64: 256, 64>}, {pipeline_mode = #tpu.pipeline_mode<synchronous>, transform_indices = @transform_2, window_bounds = array<i64: 64, 64>}, {pipeline_mode = #tpu.pipeline_mode<synchronous>, transform_indices = @transform_3, window_bounds = array<i64: 256, 64>}, {pipeline_mode = #tpu.pipeline_mode<synchronous>, transform_indices = @transform_4, window_bounds = array<i64: 64, 128>}, {pipeline_mode = #tpu.pipeline_mode<synchronous>, transform_indices = @transform_5, window_bounds = array<i64: 32, 64>}, {pipeline_mode = #tpu.pipeline_mode<synchronous>, transform_indices = @transform_6, window_bounds = array<i64: 32, 64>}, {pipeline_mode = #tpu.pipeline_mode<synchronous>, transform_indices = @transform_7, window_bounds = array<i64: 32, 32>}, {pipeline_mode = #tpu.pipeline_mode<synchronous>, transform_indices = @transform_8, window_bounds = array<i64: 32, 32>}, {transform_indices = @transform_9, window_bounds = array<i64: 2, 8, 128>}]} {
    %c0 = arith.constant 0 : index
    %c0_0 = arith.constant 0 : index
    %c0_1 = arith.constant 0 : index
    %0 = vector.load %arg1[%c0, %c0_0, %c0_1] : memref<2x8x128xf32, #tpu.memory_space<vmem>>, vector<2x8x128xf32>
    %1 = vector.extract_strided_slice %0 {offsets = [0, 0, 0], sizes = [1, 8, 64], strides = [1, 1, 1]} : vector<2x8x128xf32> to vector<1x8x64xf32>
    %2 = vector.shape_cast %1 : vector<1x8x64xf32> to vector<8x64xf32>
    %3 = vector.extract_strided_slice %0 {offsets = [0, 0, 64], sizes = [1, 8, 64], strides = [1, 1, 1]} : vector<2x8x128xf32> to vector<1x8x64xf32>
    %4 = vector.shape_cast %3 : vector<1x8x64xf32> to vector<8x64xf32>
    %5 = tpu.concatenate %2, %4 in 0 : vector<8x64xf32>, vector<8x64xf32> -> vector<16x64xf32>
    %6 = vector.extract_strided_slice %0 {offsets = [1, 0, 0], sizes = [1, 8, 64], strides = [1, 1, 1]} : vector<2x8x128xf32> to vector<1x8x64xf32>
    %7 = vector.shape_cast %6 : vector<1x8x64xf32> to vector<8x64xf32>
    %8 = vector.extract_strided_slice %0 {offsets = [1, 0, 64], sizes = [1, 8, 64], strides = [1, 1, 1]} : vector<2x8x128xf32> to vector<1x8x64xf32>
    %9 = vector.shape_cast %8 : vector<1x8x64xf32> to vector<8x64xf32>
    %10 = tpu.concatenate %7, %9 in 0 : vector<8x64xf32>, vector<8x64xf32> -> vector<16x64xf32>
    %11 = tpu.concatenate %5, %10 in 0 : vector<16x64xf32>, vector<16x64xf32> -> vector<32x64xf32>
    %12 = arith.mulf %11, %11 : vector<32x64xf32>
    %cst = arith.constant dense<0.000000e+00> : vector<32xf32>
    %13 = vector.multi_reduction <add>, %12, %cst [1] : vector<32x64xf32> to vector<32xf32>
    %14 = vector.shape_cast %13 : vector<32xf32> to vector<32x1xf32>
    %cst_2 = arith.constant 6.400000e+01 : f32
    %15 = vector.broadcast %cst_2 : f32 to vector<32x1xf32>
    %16 = arith.divf %14, %15 : vector<32x1xf32>
    %cst_3 = arith.constant 9.99999974E-6 : f32
    %17 = vector.broadcast %cst_3 : f32 to vector<32x1xf32>
    %18 = arith.addf %16, %17 : vector<32x1xf32>
    %19 = math.rsqrt %18 : vector<32x1xf32>
    %20 = vector.broadcast %19 : vector<32x1xf32> to vector<32x64xf32>
    %21 = arith.mulf %11, %20 : vector<32x64xf32>
    %c0_4 = arith.constant 0 : index
    %c0_5 = arith.constant 0 : index
    %22 = vector.load %arg2[%c0_4, %c0_5] : memref<256x64xf32, #tpu.memory_space<vmem>>, vector<256x64xf32>
    %cst_6 = arith.constant dense<0.000000e+00> : vector<32x256xf32>
    %23 = tpu.matmul %21, %22, %cst_6 {dimension_numbers = #tpu.dot_dimension_numbers<[1], [1], [0], [0], [0, 0, 1, 0], [], []>} : vector<32x64xf32>, vector<256x64xf32>, vector<32x256xf32> -> vector<32x256xf32>
    %24 = vector.extract_strided_slice %23 {offsets = [0, 0], sizes = [32, 64], strides = [1, 1]} : vector<32x256xf32> to vector<32x64xf32>
    %25 = vector.extract_strided_slice %23 {offsets = [0, 64], sizes = [32, 32], strides = [1, 1]} : vector<32x256xf32> to vector<32x32xf32>
    %26 = vector.extract_strided_slice %23 {offsets = [0, 96], sizes = [32, 32], strides = [1, 1]} : vector<32x256xf32> to vector<32x32xf32>
    %27 = vector.extract_strided_slice %23 {offsets = [0, 128], sizes = [32, 64], strides = [1, 1]} : vector<32x256xf32> to vector<32x64xf32>
    %28 = vector.extract_strided_slice %23 {offsets = [0, 192], sizes = [32, 32], strides = [1, 1]} : vector<32x256xf32> to vector<32x32xf32>
    %c0_7 = arith.constant 0 : index
    %c0_8 = arith.constant 0 : index
    %29 = vector.load %arg6[%c0_7, %c0_8] : memref<32x64xf32, #tpu.memory_space<vmem>>, vector<32x64xf32>
    %30 = arith.mulf %24, %29 : vector<32x64xf32>
    %c0_9 = arith.constant 0 : index
    %c0_10 = arith.constant 0 : index
    %31 = vector.load %arg7[%c0_9, %c0_10] : memref<32x64xf32, #tpu.memory_space<vmem>>, vector<32x64xf32>
    %32 = arith.mulf %27, %31 : vector<32x64xf32>
    %33 = arith.addf %30, %32 : vector<32x64xf32>
    %c0_11 = arith.constant 0 : index
    %c0_12 = arith.constant 0 : index
    %34 = vector.load %arg8[%c0_11, %c0_12] : memref<32x32xf32, #tpu.memory_space<vmem>>, vector<32x32xf32>
    %35 = arith.mulf %25, %34 : vector<32x32xf32>
    %c0_13 = arith.constant 0 : index
    %c0_14 = arith.constant 0 : index
    %36 = vector.load %arg9[%c0_13, %c0_14] : memref<32x32xf32, #tpu.memory_space<vmem>>, vector<32x32xf32>
    %37 = arith.mulf %28, %36 : vector<32x32xf32>
    %38 = arith.addf %35, %37 : vector<32x32xf32>
    %39 = tpu.iota {dimensions = array<i32: 0>} : vector<16x16xi32>
    %40 = tpu.iota {dimensions = array<i32: 1>} : vector<16x16xi32>
    %41 = arith.cmpi sge, %39, %40 : vector<16x16xi32>
    %42 = arith.subi %39, %40 : vector<16x16xi32>
    %c8_i32 = arith.constant 8 : i32
    %43 = vector.broadcast %c8_i32 : i32 to vector<16x16xi32>
    %44 = arith.cmpi sle, %42, %43 : vector<16x16xi32>
    %45 = arith.andi %41, %44 : vector<16x16xi1>
    %cst_15 = arith.constant 0.000000e+00 : f32
    %cst_16 = arith.constant -1.000000e+30 : f32
    %46 = vector.broadcast %cst_15 : f32 to vector<16x16xf32>
    %47 = vector.broadcast %cst_16 : f32 to vector<16x16xf32>
    %48 = arith.select %45, %46, %47 : vector<16x16xi1>, vector<16x16xf32>
    %49 = tpu.concatenate %48, %48, %48, %48 in 0 : vector<16x16xf32>, vector<16x16xf32>, vector<16x16xf32>, vector<16x16xf32> -> vector<64x16xf32>
    %c0_17 = arith.constant 0 : index
    %c0_18 = arith.constant 0 : index
    %50 = vector.load %arg3[%c0_17, %c0_18] : memref<64x64xf32, #tpu.memory_space<vmem>>, vector<64x64xf32>
    %51 = vector.extract_strided_slice %33 {offsets = [0, 0], sizes = [16, 64], strides = [1, 1]} : vector<32x64xf32> to vector<16x64xf32>
    %52 = vector.extract_strided_slice %38 {offsets = [0, 0], sizes = [16, 32], strides = [1, 1]} : vector<32x32xf32> to vector<16x32xf32>
    %53 = vector.extract_strided_slice %26 {offsets = [0, 0], sizes = [16, 32], strides = [1, 1]} : vector<32x32xf32> to vector<16x32xf32>
    %54 = vector.extract_strided_slice %51 {offsets = [0, 0], sizes = [16, 16], strides = [1, 1]} : vector<16x64xf32> to vector<16x16xf32>
    %55 = vector.extract_strided_slice %52 {offsets = [0, 0], sizes = [16, 16], strides = [1, 1]} : vector<16x32xf32> to vector<16x16xf32>
    %cst_19 = arith.constant dense<0.000000e+00> : vector<16x16xf32>
    %56 = tpu.matmul %54, %55, %cst_19 {dimension_numbers = #tpu.dot_dimension_numbers<[1], [1], [0], [0], [0, 0, 1, 0], [], []>} : vector<16x16xf32>, vector<16x16xf32>, vector<16x16xf32> -> vector<16x16xf32>
    %57 = vector.extract_strided_slice %51 {offsets = [0, 16], sizes = [16, 16], strides = [1, 1]} : vector<16x64xf32> to vector<16x16xf32>
    %58 = vector.extract_strided_slice %52 {offsets = [0, 0], sizes = [16, 16], strides = [1, 1]} : vector<16x32xf32> to vector<16x16xf32>
    %cst_20 = arith.constant dense<0.000000e+00> : vector<16x16xf32>
    %59 = tpu.matmul %57, %58, %cst_20 {dimension_numbers = #tpu.dot_dimension_numbers<[1], [1], [0], [0], [0, 0, 1, 0], [], []>} : vector<16x16xf32>, vector<16x16xf32>, vector<16x16xf32> -> vector<16x16xf32>
    %60 = vector.extract_strided_slice %51 {offsets = [0, 32], sizes = [16, 16], strides = [1, 1]} : vector<16x64xf32> to vector<16x16xf32>
    %61 = vector.extract_strided_slice %52 {offsets = [0, 16], sizes = [16, 16], strides = [1, 1]} : vector<16x32xf32> to vector<16x16xf32>
    %cst_21 = arith.constant dense<0.000000e+00> : vector<16x16xf32>
    %62 = tpu.matmul %60, %61, %cst_21 {dimension_numbers = #tpu.dot_dimension_numbers<[1], [1], [0], [0], [0, 0, 1, 0], [], []>} : vector<16x16xf32>, vector<16x16xf32>, vector<16x16xf32> -> vector<16x16xf32>
    %63 = vector.extract_strided_slice %51 {offsets = [0, 48], sizes = [16, 16], strides = [1, 1]} : vector<16x64xf32> to vector<16x16xf32>
    %64 = vector.extract_strided_slice %52 {offsets = [0, 16], sizes = [16, 16], strides = [1, 1]} : vector<16x32xf32> to vector<16x16xf32>
    %cst_22 = arith.constant dense<0.000000e+00> : vector<16x16xf32>
    %65 = tpu.matmul %63, %64, %cst_22 {dimension_numbers = #tpu.dot_dimension_numbers<[1], [1], [0], [0], [0, 0, 1, 0], [], []>} : vector<16x16xf32>, vector<16x16xf32>, vector<16x16xf32> -> vector<16x16xf32>
    %66 = tpu.concatenate %56, %59, %62, %65 in 0 : vector<16x16xf32>, vector<16x16xf32>, vector<16x16xf32>, vector<16x16xf32> -> vector<64x16xf32>
    %67 = arith.addf %66, %49 : vector<64x16xf32>
    %cst_23 = arith.constant dense<0xFF800000> : vector<64xf32>
    %68 = vector.multi_reduction <maximumf>, %67, %cst_23 [1] : vector<64x16xf32> to vector<64xf32>
    %69 = vector.shape_cast %68 : vector<64xf32> to vector<64x1xf32>
    %70 = vector.broadcast %69 : vector<64x1xf32> to vector<64x16xf32>
    %71 = arith.subf %67, %70 : vector<64x16xf32>
    %72 = math.exp %71 : vector<64x16xf32>
    %cst_24 = arith.constant dense<0.000000e+00> : vector<64xf32>
    %73 = vector.multi_reduction <add>, %72, %cst_24 [1] : vector<64x16xf32> to vector<64xf32>
    %74 = vector.shape_cast %73 : vector<64xf32> to vector<64x1xf32>
    %75 = tpu.reciprocal %74 {approx = true} : vector<64x1xf32> -> vector<64x1xf32>
    %76 = vector.broadcast %75 : vector<64x1xf32> to vector<64x16xf32>
    %77 = arith.mulf %72, %76 : vector<64x16xf32>
    %cst_25 = arith.constant 0.000000e+00 : f32
    %78 = vector.broadcast %cst_25 : f32 to vector<16x64xf32>
    %79 = vector.extract_strided_slice %53 {offsets = [0, 0], sizes = [16, 16], strides = [1, 1]} : vector<16x32xf32> to vector<16x16xf32>
    %80 = vector.extract_strided_slice %77 {offsets = [0, 0], sizes = [32, 16], strides = [1, 1]} : vector<64x16xf32> to vector<32x16xf32>
    %cst_26 = arith.constant dense<0.000000e+00> : vector<32x16xf32>
    %81 = tpu.matmul %80, %79, %cst_26 {dimension_numbers = #tpu.dot_dimension_numbers<[1], [0], [0], [1], [0, 0, 1, 1], [], []>} : vector<32x16xf32>, vector<16x16xf32>, vector<32x16xf32> -> vector<32x16xf32>
    %82 = vector.extract_strided_slice %81 {offsets = [0, 0], sizes = [16, 16], strides = [1, 1]} : vector<32x16xf32> to vector<16x16xf32>
    %83 = vector.extract_strided_slice %50 {offsets = [0, 0], sizes = [64, 16], strides = [1, 1]} : vector<64x64xf32> to vector<64x16xf32>
    %cst_27 = arith.constant dense<0.000000e+00> : vector<16x64xf32>
    %84 = tpu.matmul %82, %83, %cst_27 {dimension_numbers = #tpu.dot_dimension_numbers<[1], [1], [0], [0], [0, 0, 1, 0], [], []>} : vector<16x16xf32>, vector<64x16xf32>, vector<16x64xf32> -> vector<16x64xf32>
    %85 = arith.addf %78, %84 : vector<16x64xf32>
    %86 = vector.extract_strided_slice %81 {offsets = [16, 0], sizes = [16, 16], strides = [1, 1]} : vector<32x16xf32> to vector<16x16xf32>
    %87 = vector.extract_strided_slice %50 {offsets = [0, 16], sizes = [64, 16], strides = [1, 1]} : vector<64x64xf32> to vector<64x16xf32>
    %cst_28 = arith.constant dense<0.000000e+00> : vector<16x64xf32>
    %88 = tpu.matmul %86, %87, %cst_28 {dimension_numbers = #tpu.dot_dimension_numbers<[1], [1], [0], [0], [0, 0, 1, 0], [], []>} : vector<16x16xf32>, vector<64x16xf32>, vector<16x64xf32> -> vector<16x64xf32>
    %89 = arith.addf %85, %88 : vector<16x64xf32>
    %90 = vector.extract_strided_slice %53 {offsets = [0, 16], sizes = [16, 16], strides = [1, 1]} : vector<16x32xf32> to vector<16x16xf32>
    %91 = vector.extract_strided_slice %77 {offsets = [32, 0], sizes = [32, 16], strides = [1, 1]} : vector<64x16xf32> to vector<32x16xf32>
    %cst_29 = arith.constant dense<0.000000e+00> : vector<32x16xf32>
    %92 = tpu.matmul %91, %90, %cst_29 {dimension_numbers = #tpu.dot_dimension_numbers<[1], [0], [0], [1], [0, 0, 1, 1], [], []>} : vector<32x16xf32>, vector<16x16xf32>, vector<32x16xf32> -> vector<32x16xf32>
    %93 = vector.extract_strided_slice %92 {offsets = [0, 0], sizes = [16, 16], strides = [1, 1]} : vector<32x16xf32> to vector<16x16xf32>
    %94 = vector.extract_strided_slice %50 {offsets = [0, 32], sizes = [64, 16], strides = [1, 1]} : vector<64x64xf32> to vector<64x16xf32>
    %cst_30 = arith.constant dense<0.000000e+00> : vector<16x64xf32>
    %95 = tpu.matmul %93, %94, %cst_30 {dimension_numbers = #tpu.dot_dimension_numbers<[1], [1], [0], [0], [0, 0, 1, 0], [], []>} : vector<16x16xf32>, vector<64x16xf32>, vector<16x64xf32> -> vector<16x64xf32>
    %96 = arith.addf %89, %95 : vector<16x64xf32>
    %97 = vector.extract_strided_slice %92 {offsets = [16, 0], sizes = [16, 16], strides = [1, 1]} : vector<32x16xf32> to vector<16x16xf32>
    %98 = vector.extract_strided_slice %50 {offsets = [0, 48], sizes = [64, 16], strides = [1, 1]} : vector<64x64xf32> to vector<64x16xf32>
    %cst_31 = arith.constant dense<0.000000e+00> : vector<16x64xf32>
    %99 = tpu.matmul %97, %98, %cst_31 {dimension_numbers = #tpu.dot_dimension_numbers<[1], [1], [0], [0], [0, 0, 1, 0], [], []>} : vector<16x16xf32>, vector<64x16xf32>, vector<16x64xf32> -> vector<16x64xf32>
    %100 = arith.addf %96, %99 : vector<16x64xf32>
    %101 = vector.extract_strided_slice %33 {offsets = [16, 0], sizes = [16, 64], strides = [1, 1]} : vector<32x64xf32> to vector<16x64xf32>
    %102 = vector.extract_strided_slice %38 {offsets = [16, 0], sizes = [16, 32], strides = [1, 1]} : vector<32x32xf32> to vector<16x32xf32>
    %103 = vector.extract_strided_slice %26 {offsets = [16, 0], sizes = [16, 32], strides = [1, 1]} : vector<32x32xf32> to vector<16x32xf32>
    %104 = vector.extract_strided_slice %101 {offsets = [0, 0], sizes = [16, 16], strides = [1, 1]} : vector<16x64xf32> to vector<16x16xf32>
    %105 = vector.extract_strided_slice %102 {offsets = [0, 0], sizes = [16, 16], strides = [1, 1]} : vector<16x32xf32> to vector<16x16xf32>
    %cst_32 = arith.constant dense<0.000000e+00> : vector<16x16xf32>
    %106 = tpu.matmul %104, %105, %cst_32 {dimension_numbers = #tpu.dot_dimension_numbers<[1], [1], [0], [0], [0, 0, 1, 0], [], []>} : vector<16x16xf32>, vector<16x16xf32>, vector<16x16xf32> -> vector<16x16xf32>
    %107 = vector.extract_strided_slice %101 {offsets = [0, 16], sizes = [16, 16], strides = [1, 1]} : vector<16x64xf32> to vector<16x16xf32>
    %108 = vector.extract_strided_slice %102 {offsets = [0, 0], sizes = [16, 16], strides = [1, 1]} : vector<16x32xf32> to vector<16x16xf32>
    %cst_33 = arith.constant dense<0.000000e+00> : vector<16x16xf32>
    %109 = tpu.matmul %107, %108, %cst_33 {dimension_numbers = #tpu.dot_dimension_numbers<[1], [1], [0], [0], [0, 0, 1, 0], [], []>} : vector<16x16xf32>, vector<16x16xf32>, vector<16x16xf32> -> vector<16x16xf32>
    %110 = vector.extract_strided_slice %101 {offsets = [0, 32], sizes = [16, 16], strides = [1, 1]} : vector<16x64xf32> to vector<16x16xf32>
    %111 = vector.extract_strided_slice %102 {offsets = [0, 16], sizes = [16, 16], strides = [1, 1]} : vector<16x32xf32> to vector<16x16xf32>
    %cst_34 = arith.constant dense<0.000000e+00> : vector<16x16xf32>
    %112 = tpu.matmul %110, %111, %cst_34 {dimension_numbers = #tpu.dot_dimension_numbers<[1], [1], [0], [0], [0, 0, 1, 0], [], []>} : vector<16x16xf32>, vector<16x16xf32>, vector<16x16xf32> -> vector<16x16xf32>
    %113 = vector.extract_strided_slice %101 {offsets = [0, 48], sizes = [16, 16], strides = [1, 1]} : vector<16x64xf32> to vector<16x16xf32>
    %114 = vector.extract_strided_slice %102 {offsets = [0, 16], sizes = [16, 16], strides = [1, 1]} : vector<16x32xf32> to vector<16x16xf32>
    %cst_35 = arith.constant dense<0.000000e+00> : vector<16x16xf32>
    %115 = tpu.matmul %113, %114, %cst_35 {dimension_numbers = #tpu.dot_dimension_numbers<[1], [1], [0], [0], [0, 0, 1, 0], [], []>} : vector<16x16xf32>, vector<16x16xf32>, vector<16x16xf32> -> vector<16x16xf32>
    %116 = tpu.concatenate %106, %109, %112, %115 in 0 : vector<16x16xf32>, vector<16x16xf32>, vector<16x16xf32>, vector<16x16xf32> -> vector<64x16xf32>
    %117 = arith.addf %116, %49 : vector<64x16xf32>
    %cst_36 = arith.constant dense<0xFF800000> : vector<64xf32>
    %118 = vector.multi_reduction <maximumf>, %117, %cst_36 [1] : vector<64x16xf32> to vector<64xf32>
    %119 = vector.shape_cast %118 : vector<64xf32> to vector<64x1xf32>
    %120 = vector.broadcast %119 : vector<64x1xf32> to vector<64x16xf32>
    %121 = arith.subf %117, %120 : vector<64x16xf32>
    %122 = math.exp %121 : vector<64x16xf32>
    %cst_37 = arith.constant dense<0.000000e+00> : vector<64xf32>
    %123 = vector.multi_reduction <add>, %122, %cst_37 [1] : vector<64x16xf32> to vector<64xf32>
    %124 = vector.shape_cast %123 : vector<64xf32> to vector<64x1xf32>
    %125 = tpu.reciprocal %124 {approx = true} : vector<64x1xf32> -> vector<64x1xf32>
    %126 = vector.broadcast %125 : vector<64x1xf32> to vector<64x16xf32>
    %127 = arith.mulf %122, %126 : vector<64x16xf32>
    %cst_38 = arith.constant 0.000000e+00 : f32
    %128 = vector.broadcast %cst_38 : f32 to vector<16x64xf32>
    %129 = vector.extract_strided_slice %103 {offsets = [0, 0], sizes = [16, 16], strides = [1, 1]} : vector<16x32xf32> to vector<16x16xf32>
    %130 = vector.extract_strided_slice %127 {offsets = [0, 0], sizes = [32, 16], strides = [1, 1]} : vector<64x16xf32> to vector<32x16xf32>
    %cst_39 = arith.constant dense<0.000000e+00> : vector<32x16xf32>
    %131 = tpu.matmul %130, %129, %cst_39 {dimension_numbers = #tpu.dot_dimension_numbers<[1], [0], [0], [1], [0, 0, 1, 1], [], []>} : vector<32x16xf32>, vector<16x16xf32>, vector<32x16xf32> -> vector<32x16xf32>
    %132 = vector.extract_strided_slice %131 {offsets = [0, 0], sizes = [16, 16], strides = [1, 1]} : vector<32x16xf32> to vector<16x16xf32>
    %133 = vector.extract_strided_slice %50 {offsets = [0, 0], sizes = [64, 16], strides = [1, 1]} : vector<64x64xf32> to vector<64x16xf32>
    %cst_40 = arith.constant dense<0.000000e+00> : vector<16x64xf32>
    %134 = tpu.matmul %132, %133, %cst_40 {dimension_numbers = #tpu.dot_dimension_numbers<[1], [1], [0], [0], [0, 0, 1, 0], [], []>} : vector<16x16xf32>, vector<64x16xf32>, vector<16x64xf32> -> vector<16x64xf32>
    %135 = arith.addf %128, %134 : vector<16x64xf32>
    %136 = vector.extract_strided_slice %131 {offsets = [16, 0], sizes = [16, 16], strides = [1, 1]} : vector<32x16xf32> to vector<16x16xf32>
    %137 = vector.extract_strided_slice %50 {offsets = [0, 16], sizes = [64, 16], strides = [1, 1]} : vector<64x64xf32> to vector<64x16xf32>
    %cst_41 = arith.constant dense<0.000000e+00> : vector<16x64xf32>
    %138 = tpu.matmul %136, %137, %cst_41 {dimension_numbers = #tpu.dot_dimension_numbers<[1], [1], [0], [0], [0, 0, 1, 0], [], []>} : vector<16x16xf32>, vector<64x16xf32>, vector<16x64xf32> -> vector<16x64xf32>
    %139 = arith.addf %135, %138 : vector<16x64xf32>
    %140 = vector.extract_strided_slice %103 {offsets = [0, 16], sizes = [16, 16], strides = [1, 1]} : vector<16x32xf32> to vector<16x16xf32>
    %141 = vector.extract_strided_slice %127 {offsets = [32, 0], sizes = [32, 16], strides = [1, 1]} : vector<64x16xf32> to vector<32x16xf32>
    %cst_42 = arith.constant dense<0.000000e+00> : vector<32x16xf32>
    %142 = tpu.matmul %141, %140, %cst_42 {dimension_numbers = #tpu.dot_dimension_numbers<[1], [0], [0], [1], [0, 0, 1, 1], [], []>} : vector<32x16xf32>, vector<16x16xf32>, vector<32x16xf32> -> vector<32x16xf32>
    %143 = vector.extract_strided_slice %142 {offsets = [0, 0], sizes = [16, 16], strides = [1, 1]} : vector<32x16xf32> to vector<16x16xf32>
    %144 = vector.extract_strided_slice %50 {offsets = [0, 32], sizes = [64, 16], strides = [1, 1]} : vector<64x64xf32> to vector<64x16xf32>
    %cst_43 = arith.constant dense<0.000000e+00> : vector<16x64xf32>
    %145 = tpu.matmul %143, %144, %cst_43 {dimension_numbers = #tpu.dot_dimension_numbers<[1], [1], [0], [0], [0, 0, 1, 0], [], []>} : vector<16x16xf32>, vector<64x16xf32>, vector<16x64xf32> -> vector<16x64xf32>
    %146 = arith.addf %139, %145 : vector<16x64xf32>
    %147 = vector.extract_strided_slice %142 {offsets = [16, 0], sizes = [16, 16], strides = [1, 1]} : vector<32x16xf32> to vector<16x16xf32>
    %148 = vector.extract_strided_slice %50 {offsets = [0, 48], sizes = [64, 16], strides = [1, 1]} : vector<64x64xf32> to vector<64x16xf32>
    %cst_44 = arith.constant dense<0.000000e+00> : vector<16x64xf32>
    %149 = tpu.matmul %147, %148, %cst_44 {dimension_numbers = #tpu.dot_dimension_numbers<[1], [1], [0], [0], [0, 0, 1, 0], [], []>} : vector<16x16xf32>, vector<64x16xf32>, vector<16x64xf32> -> vector<16x64xf32>
    %150 = arith.addf %146, %149 : vector<16x64xf32>
    %151 = tpu.concatenate %100, %150 in 0 : vector<16x64xf32>, vector<16x64xf32> -> vector<32x64xf32>
    %152 = arith.addf %11, %151 : vector<32x64xf32>
    %153 = arith.mulf %152, %152 : vector<32x64xf32>
    %cst_45 = arith.constant dense<0.000000e+00> : vector<32xf32>
    %154 = vector.multi_reduction <add>, %153, %cst_45 [1] : vector<32x64xf32> to vector<32xf32>
    %155 = vector.shape_cast %154 : vector<32xf32> to vector<32x1xf32>
    %cst_46 = arith.constant 6.400000e+01 : f32
    %156 = vector.broadcast %cst_46 : f32 to vector<32x1xf32>
    %157 = arith.divf %155, %156 : vector<32x1xf32>
    %cst_47 = arith.constant 9.99999974E-6 : f32
    %158 = vector.broadcast %cst_47 : f32 to vector<32x1xf32>
    %159 = arith.addf %157, %158 : vector<32x1xf32>
    %160 = math.rsqrt %159 : vector<32x1xf32>
    %161 = vector.broadcast %160 : vector<32x1xf32> to vector<32x64xf32>
    %162 = arith.mulf %152, %161 : vector<32x64xf32>
    %c0_48 = arith.constant 0 : index
    %c0_49 = arith.constant 0 : index
    %163 = vector.load %arg4[%c0_48, %c0_49] : memref<256x64xf32, #tpu.memory_space<vmem>>, vector<256x64xf32>
    %cst_50 = arith.constant dense<0.000000e+00> : vector<32x256xf32>
    %164 = tpu.matmul %162, %163, %cst_50 {dimension_numbers = #tpu.dot_dimension_numbers<[1], [1], [0], [0], [0, 0, 1, 0], [], []>} : vector<32x64xf32>, vector<256x64xf32>, vector<32x256xf32> -> vector<32x256xf32>
    %165 = vector.extract_strided_slice %164 {offsets = [0, 0], sizes = [32, 128], strides = [1, 1]} : vector<32x256xf32> to vector<32x128xf32>
    %166 = vector.extract_strided_slice %164 {offsets = [0, 128], sizes = [32, 128], strides = [1, 1]} : vector<32x256xf32> to vector<32x128xf32>
    %167 = arith.negf %165 : vector<32x128xf32>
    %168 = math.exp %167 : vector<32x128xf32>
    %cst_51 = arith.constant 1.000000e+00 : f32
    %169 = vector.broadcast %cst_51 : f32 to vector<32x128xf32>
    %170 = arith.addf %169, %168 : vector<32x128xf32>
    %171 = arith.divf %169, %170 : vector<32x128xf32>
    %172 = arith.mulf %165, %171 : vector<32x128xf32>
    %173 = arith.mulf %172, %166 : vector<32x128xf32>
    %c0_52 = arith.constant 0 : index
    %c0_53 = arith.constant 0 : index
    %174 = vector.load %arg5[%c0_52, %c0_53] : memref<64x128xf32, #tpu.memory_space<vmem>>, vector<64x128xf32>
    %cst_54 = arith.constant dense<0.000000e+00> : vector<32x64xf32>
    %175 = tpu.matmul %173, %174, %cst_54 {dimension_numbers = #tpu.dot_dimension_numbers<[1], [1], [0], [0], [0, 0, 1, 0], [], []>} : vector<32x128xf32>, vector<64x128xf32>, vector<32x64xf32> -> vector<32x64xf32>
    %176 = arith.addf %152, %175 : vector<32x64xf32>
    %177 = vector.extract_strided_slice %176 {offsets = [0, 0], sizes = [16, 64], strides = [1, 1]} : vector<32x64xf32> to vector<16x64xf32>
    %178 = vector.extract_strided_slice %177 {offsets = [0, 0], sizes = [8, 64], strides = [1, 1]} : vector<16x64xf32> to vector<8x64xf32>
    %179 = vector.extract_strided_slice %177 {offsets = [8, 0], sizes = [8, 64], strides = [1, 1]} : vector<16x64xf32> to vector<8x64xf32>
    %180 = tpu.concatenate %178, %179 in 1 : vector<8x64xf32>, vector<8x64xf32> -> vector<8x128xf32>
    %c0_55 = arith.constant 0 : index
    %c0_56 = arith.constant 0 : index
    %c0_57 = arith.constant 0 : index
    %181 = vector.load %arg10[%c0_55, %c0_56, %c0_57] : memref<2x8x128xf32, #tpu.memory_space<vmem>>, vector<1x8x128xf32>
    %182 = vector.shape_cast %181 : vector<1x8x128xf32> to vector<8x128xf32>
    %183 = vector.shape_cast %180 : vector<8x128xf32> to vector<1x8x128xf32>
    tpu.vector_store %arg10[%c0_55, %c0_56, %c0_57], %183 {strides = array<i32>} : memref<2x8x128xf32, #tpu.memory_space<vmem>>, vector<1x8x128xf32>,
    %184 = vector.extract_strided_slice %176 {offsets = [16, 0], sizes = [16, 64], strides = [1, 1]} : vector<32x64xf32> to vector<16x64xf32>
    %185 = vector.extract_strided_slice %184 {offsets = [0, 0], sizes = [8, 64], strides = [1, 1]} : vector<16x64xf32> to vector<8x64xf32>
    %186 = vector.extract_strided_slice %184 {offsets = [8, 0], sizes = [8, 64], strides = [1, 1]} : vector<16x64xf32> to vector<8x64xf32>
    %187 = tpu.concatenate %185, %186 in 1 : vector<8x64xf32>, vector<8x64xf32> -> vector<8x128xf32>
    %c1 = arith.constant 1 : index
    %c0_58 = arith.constant 0 : index
    %c0_59 = arith.constant 0 : index
    %188 = vector.load %arg10[%c1, %c0_58, %c0_59] : memref<2x8x128xf32, #tpu.memory_space<vmem>>, vector<1x8x128xf32>
    %189 = vector.shape_cast %188 : vector<1x8x128xf32> to vector<8x128xf32>
    %190 = vector.shape_cast %187 : vector<8x128xf32> to vector<1x8x128xf32>
    tpu.vector_store %arg10[%c1, %c0_58, %c0_59], %190 {strides = array<i32>} : memref<2x8x128xf32, #tpu.memory_space<vmem>>, vector<1x8x128xf32>,
    return
  }
  func.func @transform_0(%arg0: i32) -> (i32, i32, i32) {
    %c0_i32 = arith.constant 0 : i32
    %c0_i32_0 = arith.constant 0 : i32
    %c0_i32_1 = arith.constant 0 : i32
    return %arg0, %c0_i32, %c0_i32_0 : i32, i32, i32
  }
  func.func @transform_1(%arg0: i32) -> (i32, i32) {
    %c0_i32 = arith.constant 0 : i32
    %c0_i32_0 = arith.constant 0 : i32
    %c0_i32_1 = arith.constant 0 : i32
    return %c0_i32, %c0_i32_0 : i32, i32
  }
  func.func @transform_2(%arg0: i32) -> (i32, i32) {
    %c0_i32 = arith.constant 0 : i32
    %c0_i32_0 = arith.constant 0 : i32
    %c0_i32_1 = arith.constant 0 : i32
    return %c0_i32, %c0_i32_0 : i32, i32
  }
  func.func @transform_3(%arg0: i32) -> (i32, i32) {
    %c0_i32 = arith.constant 0 : i32
    %c0_i32_0 = arith.constant 0 : i32
    %c0_i32_1 = arith.constant 0 : i32
    return %c0_i32, %c0_i32_0 : i32, i32
  }
  func.func @transform_4(%arg0: i32) -> (i32, i32) {
    %c0_i32 = arith.constant 0 : i32
    %c0_i32_0 = arith.constant 0 : i32
    %c0_i32_1 = arith.constant 0 : i32
    return %c0_i32, %c0_i32_0 : i32, i32
  }
  func.func @transform_5(%arg0: i32) -> (i32, i32) {
    %c0_i32 = arith.constant 0 : i32
    %c0_i32_0 = arith.constant 0 : i32
    %c0_i32_1 = arith.constant 0 : i32
    return %c0_i32, %c0_i32_0 : i32, i32
  }
  func.func @transform_6(%arg0: i32) -> (i32, i32) {
    %c0_i32 = arith.constant 0 : i32
    %c0_i32_0 = arith.constant 0 : i32
    %c0_i32_1 = arith.constant 0 : i32
    return %c0_i32, %c0_i32_0 : i32, i32
  }
  func.func @transform_7(%arg0: i32) -> (i32, i32) {
    %c0_i32 = arith.constant 0 : i32
    %c0_i32_0 = arith.constant 0 : i32
    %c0_i32_1 = arith.constant 0 : i32
    return %c0_i32, %c0_i32_0 : i32, i32
  }
  func.func @transform_8(%arg0: i32) -> (i32, i32) {
    %c0_i32 = arith.constant 0 : i32
    %c0_i32_0 = arith.constant 0 : i32
    %c0_i32_1 = arith.constant 0 : i32
    return %c0_i32, %c0_i32_0 : i32, i32
  }
  func.func @transform_9(%arg0: i32) -> (i32, i32, i32) {
    %c0_i32 = arith.constant 0 : i32
    %c0_i32_0 = arith.constant 0 : i32
    %c0_i32_1 = arith.constant 0 : i32
    return %arg0, %c0_i32, %c0_i32_0 : i32, i32, i32
  }
}

</mosaic_0001>

<bundles_post_ra>
// kernel: tile.30
= control target key start
LH: loop header
LB: loop body
LE: loop exit
PB: predicated region body
PF: predicated region fallthrough
CT: control target
= control target key end

     0   :  { %s312_s0 = inlined_call_operand.vmem [shape: f32[16,16], index: 0, kind: input, shape index: {}]   ;;  %s313_s1 = inlined_call_operand.vmem [shape: f32[2,16,2,16], index: 1, kind: output, shape index: {}]  }
   0x1   :  { %v4_v0 = vld [vmem:[%s312_s0] ss:$0 sm:$0xff]  ;;  %v113_v1 = vld [vmem:[%s312_s0 + $0x1] ss:$0 sm:$0xff]  ;;  %v116_v2 = vld [vmem:[%s312_s0 + $0x2] ss:$0 sm:$0xff] }
   0x2   :  { %5 = vst [vmem:[%s313_s1] sm:$0x3] %v4_v0  ;;  %112 = vst [vmem:[%s313_s1 + $0x20] sm:$0x3] %v4_v0  ;;  %v119_v3 = vld [vmem:[%s312_s0 + $0x3] ss:$0 sm:$0xff] }
   0x3   :  { %114 = vst [vmem:[%s313_s1 + $0x2] sm:$0x3] %v113_v1  ;;  %115 = vst [vmem:[%s313_s1 + $0x22] sm:$0x3] %v113_v1  ;;  %v122_v4 = vld [vmem:[%s312_s0 + $0x4] ss:$0 sm:$0xff] }
   0x4   :  { %117 = vst [vmem:[%s313_s1 + $0x4] sm:$0x3] %v116_v2  ;;  %118 = vst [vmem:[%s313_s1 + $0x24] sm:$0x3] %v116_v2  ;;  %v125_v5 = vld [vmem:[%s312_s0 + $0x5] ss:$0 sm:$0xff] }
   0x5   :  { %120 = vst [vmem:[%s313_s1 + $0x6] sm:$0x3] %v119_v3  ;;  %121 = vst [vmem:[%s313_s1 + $0x26] sm:$0x3] %v119_v3  ;;  %v128_v6 = vld [vmem:[%s312_s0 + $0x6] ss:$0 sm:$0xff] }
   0x6   :  { %123 = vst [vmem:[%s313_s1 + $0x8] sm:$0x3] %v122_v4  ;;  %124 = vst [vmem:[%s313_s1 + $0x28] sm:$0x3] %v122_v4  ;;  %v131_v7 = vld [vmem:[%s312_s0 + $0x7] ss:$0 sm:$0xff] }
   0x7   :  { %126 = vst [vmem:[%s313_s1 + $0xa] sm:$0x3] %v125_v5  ;;  %127 = vst [vmem:[%s313_s1 + $0x2a] sm:$0x3] %v125_v5  ;;  %v134_v8 = vld [vmem:[%s312_s0 + $0x8] ss:$0 sm:$0xff] }
   0x8   :  { %129 = vst [vmem:[%s313_s1 + $0xc] sm:$0x3] %v128_v6  ;;  %130 = vst [vmem:[%s313_s1 + $0x2c] sm:$0x3] %v128_v6  ;;  %v137_v9 = vld [vmem:[%s312_s0 + $0x9] ss:$0 sm:$0xff] }
   0x9   :  { %132 = vst [vmem:[%s313_s1 + $0xe] sm:$0x3] %v131_v7  ;;  %133 = vst [vmem:[%s313_s1 + $0x2e] sm:$0x3] %v131_v7  ;;  %v140_v10 = vld [vmem:[%s312_s0 + $0xa] ss:$0 sm:$0xff] }
   0xa   :  { %135 = vst [vmem:[%s313_s1 + $0x10] sm:$0x3] %v134_v8  ;;  %136 = vst [vmem:[%s313_s1 + $0x30] sm:$0x3] %v134_v8  ;;  %v143_v11 = vld [vmem:[%s312_s0 + $0xb] ss:$0 sm:$0xff] }
   0xb   :  { %138 = vst [vmem:[%s313_s1 + $0x12] sm:$0x3] %v137_v9  ;;  %139 = vst [vmem:[%s313_s1 + $0x32] sm:$0x3] %v137_v9  ;;  %v146_v12 = vld [vmem:[%s312_s0 + $0xc] ss:$0 sm:$0xff] }
   0xc   :  { %141 = vst [vmem:[%s313_s1 + $0x14] sm:$0x3] %v140_v10  ;;  %142 = vst [vmem:[%s313_s1 + $0x34] sm:$0x3] %v140_v10  ;;  %v149_v13 = vld [vmem:[%s312_s0 + $0xd] ss:$0 sm:$0xff] }
   0xd   :  { %144 = vst [vmem:[%s313_s1 + $0x16] sm:$0x3] %v143_v11  ;;  %145 = vst [vmem:[%s313_s1 + $0x36] sm:$0x3] %v143_v11  ;;  %v152_v14 = vld [vmem:[%s312_s0 + $0xe] ss:$0 sm:$0xff] }
   0xe   :  { %147 = vst [vmem:[%s313_s1 + $0x18] sm:$0x3] %v146_v12  ;;  %148 = vst [vmem:[%s313_s1 + $0x38] sm:$0x3] %v146_v12  ;;  %v155_v15 = vld [vmem:[%s312_s0 + $0xf] ss:$0 sm:$0xff] }
   0xf   :  { %150 = vst [vmem:[%s313_s1 + $0x1a] sm:$0x3] %v149_v13  ;;  %151 = vst [vmem:[%s313_s1 + $0x3a] sm:$0x3] %v149_v13 }
  0x10   :  { %153 = vst [vmem:[%s313_s1 + $0x1c] sm:$0x3] %v152_v14  ;;  %154 = vst [vmem:[%s313_s1 + $0x3c] sm:$0x3] %v152_v14 }
  0x11   :  { %156 = vst [vmem:[%s313_s1 + $0x1e] sm:$0x3] %v155_v15  ;;  %157 = vst [vmem:[%s313_s1 + $0x3e] sm:$0x3] %v155_v15 }

// kernel: tile.31
= control target key start
LH: loop header
LB: loop body
LE: loop exit
PB: predicated region body
PF: predicated region fallthrough
CT: control target
= control target key end

     0   :  { %vm162_vm0 = vcmask 1047556   ;;  %s304_s10 = smov 16   ;;  %vm164_vm1 = vcmask 130048   ;;  %vm201_vm2 = vcmask 261248   ;;  %s451_s0 = inlined_call_operand.vmem [shape: f32[2,16,2,16], index: 0, kind: input, shape index: {}]   ;;  %s452_s1 = inlined_call_operand.vmem [shape: f32[32,32], index: 1, kind: output, shape index: {}]  }
   0x1   :  { %v290_v0 = vld [vmem:[%s451_s0 + $0xe] sm:$0x3]  ;;  %v291_v1 = vld [vmem:[%s451_s0 + $0xc] sm:$0x3]  ;;  %v292_v2 = vld [vmem:[%s451_s0 + $0xa] sm:$0x3] }
   0x2   :  { %128 = vst [vmem:[#allocation0 + $0x38] sm:$0x3] %v290_v0  ;;  %133 = vst [vmem:[#allocation0 + $0x30] sm:$0x3] %v291_v1  ;;  %v293_v3 = vld [vmem:[%s451_s0 + $0x8] sm:$0x3] }
   0x3   :  { %138 = vst [vmem:[#allocation0 + $0x28] sm:$0x3] %v292_v2  ;;  %v294_v4 = vld [vmem:[%s451_s0 + $0x6] sm:$0x3]  ;;  %v295_v5 = vld [vmem:[%s451_s0 + $0x4] sm:$0x3] }
   0x4   :  { %143 = vst [vmem:[#allocation0 + $0x20] sm:$0x3] %v293_v3  ;;  %148 = vst [vmem:[#allocation0 + $0x18] sm:$0x3] %v294_v4  ;;  %v296_v6 = vld [vmem:[%s451_s0 + $0x2] sm:$0x3] }
   0x5   :  { %153 = vst [vmem:[#allocation0 + $0x10] sm:$0x3] %v295_v5  ;;  %v158_v7 = vld [vmem:[%s451_s0] sm:$0x3]  ;;  %157 = vst [vmem:[#allocation0 + $0x8] sm:$0x3] %v296_v6 }
   0x6   :  { %159 = vst [vmem:[#allocation0] sm:$0x3] %v158_v7  ;;  %v274_v8 = vld [vmem:[%s451_s0 + $0x2e] sm:$0x3]  ;;  %v275_v9 = vld [vmem:[%s451_s0 + $0x2c] sm:$0x3] }
   0x7   :  { %v276_v10 = vld [vmem:[%s451_s0 + $0x2a] sm:$0x3]  ;;  %48 = vst [vmem:[#allocation0 + $0xb8] sm:$0x3] %v274_v8  ;;  %53 = vst [vmem:[#allocation0 + $0xb0] sm:$0x3] %v275_v9 }
   0x8   :  { %58 = vst [vmem:[#allocation0 + $0xa8] sm:$0x3] %v276_v10  ;;  %v277_v11 = vld [vmem:[%s451_s0 + $0x28] sm:$0x3]  ;;  %v278_v12 = vld [vmem:[%s451_s0 + $0x26] sm:$0x3] }
   0x9   :  { %v279_v13 = vld [vmem:[%s451_s0 + $0x24] sm:$0x3]  ;;  %63 = vst [vmem:[#allocation0 + $0xa0] sm:$0x3] %v277_v11  ;;  %68 = vst [vmem:[#allocation0 + $0x98] sm:$0x3] %v278_v12 }
   0xa   :  { %73 = vst [vmem:[#allocation0 + $0x90] sm:$0x3] %v279_v13  ;;  %v280_v14 = vld [vmem:[%s451_s0 + $0x22] sm:$0x3]  ;;  %v281_v15 = vld [vmem:[%s451_s0 + $0x20] sm:$0x3] }
   0xb   :  { %v282_v16 = vld [vmem:[%s451_s0 + $0x1e] sm:$0x3]  ;;  %78 = vst [vmem:[#allocation0 + $0x88] sm:$0x3] %v280_v14  ;;  %83 = vst [vmem:[#allocation0 + $0x80] sm:$0x3] %v281_v15 }
   0xc   :  { %88 = vst [vmem:[#allocation0 + $0x78] sm:$0x3] %v282_v16  ;;  %v283_v17 = vld [vmem:[%s451_s0 + $0x1c] sm:$0x3]  ;;  %v284_v18 = vld [vmem:[%s451_s0 + $0x1a] sm:$0x3] }
   0xd   :  { %v285_v19 = vld [vmem:[%s451_s0 + $0x18] sm:$0x3]  ;;  %93 = vst [vmem:[#allocation0 + $0x70] sm:$0x3] %v283_v17  ;;  %98 = vst [vmem:[#allocation0 + $0x68] sm:$0x3] %v284_v18 }
   0xe   :  { %103 = vst [vmem:[#allocation0 + $0x60] sm:$0x3] %v285_v19  ;;  %v286_v20 = vld [vmem:[%s451_s0 + $0x16] sm:$0x3]  ;;  %v287_v21 = vld [vmem:[%s451_s0 + $0x14] sm:$0x3] }
   0xf   :  { %v288_v22 = vld [vmem:[%s451_s0 + $0x12] sm:$0x3]  ;;  %108 = vst [vmem:[#allocation0 + $0x58] sm:$0x3] %v286_v20  ;;  %113 = vst [vmem:[#allocation0 + $0x50] sm:$0x3] %v287_v21 }
  0x10   :  { %118 = vst [vmem:[#allocation0 + $0x48] sm:$0x3] %v288_v22  ;;  %v289_v23 = vld [vmem:[%s451_s0 + $0x10] sm:$0x3]  ;;  %v266_v24 = vld [vmem:[%s451_s0 + $0x3e] sm:$0x3] }
  0x11   :  { %v267_v25 = vld [vmem:[%s451_s0 + $0x3c] sm:$0x3]  ;;  %v196_v26 = vld [vmem:[#allocation0 + $0x1] ss:$8 sm:$0xf0]  }
  0x12   :  { %123 = vst [vmem:[#allocation0 + $0x40] sm:$0x3] %v289_v23  ;;  %8 = vst [vmem:[#allocation0 + $0xf8] sm:$0x3] %v266_v24  ;;  %v268_v27 = vld [vmem:[%s451_s0 + $0x3a] sm:$0x3] }
  0x13   :  { %13 = vst [vmem:[#allocation0 + $0xf0] sm:$0x3] %v267_v25  ;;  %v194_v28 = vld [vmem:[#allocation0 + $0x1] ss:$8 sm:$0xf]  }
  0x14   :  { %18 = vst [vmem:[#allocation0 + $0xe8] sm:$0x3] %v268_v27  ;;  %v269_v29 = vld [vmem:[%s451_s0 + $0x38] sm:$0x3]  ;;  %v198_v30 = vsel %vm162_vm0, %v196_v26, %v194_v28  ;;  %v270_v31 = vld [vmem:[%s451_s0 + $0x36] sm:$0x3] }
  0x15   :  { %23 = vst [vmem:[#allocation0 + $0xe0] sm:$0x3] %v269_v29  ;;  %v271_v32 = vld [vmem:[%s451_s0 + $0x34] sm:$0x3]  ;;  %v272_v33 = vld [vmem:[%s451_s0 + $0x32] sm:$0x3]  ;;  %199 = vrot.lane.b32.xlu0 %v198_v30, %s304_s10 }
  0x16   :  { %v217_v34 = vld [vmem:[#allocation0 + $0x81] ss:$8 sm:$0xf0]   ;;  %28 = vst [vmem:[#allocation0 + $0xd8] sm:$0x3] %v270_v31 }
  0x17   :  { %33 = vst [vmem:[#allocation0 + $0xd0] sm:$0x3] %v271_v32  ;;  %38 = vst [vmem:[#allocation0 + $0xc8] sm:$0x3] %v272_v33  ;;  %v273_v35 = vld [vmem:[%s451_s0 + $0x30] sm:$0x3] }
  0x18   :  { %v215_v36 = vld [vmem:[#allocation0 + $0x81] ss:$8 sm:$0xf]   ;;  %43 = vst [vmem:[#allocation0 + $0xc0] sm:$0x3] %v273_v35 }
  0x19   :  { %v160_v37 = vld [vmem:[#allocation0] ss:$8 sm:$0xf]   ;;  %v219_v38 = vsel %vm162_vm0, %v217_v34, %v215_v36  ;;  %v206_v39 = vld [vmem:[#allocation0 + $0x41] ss:$8 sm:$0xf0]  }
  0x1a   :  { %v161_v40 = vld [vmem:[#allocation0] ss:$8 sm:$0xf0]   ;;  %220 = vrot.lane.b32.xlu1 %v219_v38, %s304_s10  ;;  %v204_v44 = vld [vmem:[#allocation0 + $0x41] ss:$8 sm:$0xf]  }
  0x1b   :  { %v163_v41 = vsel %vm162_vm0, %v161_v40, %v160_v37  ;;  %v176_v42 = vld [vmem:[#allocation0 + $0x80] ss:$8 sm:$0xf]   ;;  %v208_v47 = vsel %vm162_vm0, %v206_v39, %v204_v44 }
  0x1c   :  { %v178_v43 = vld [vmem:[#allocation0 + $0x80] ss:$8 sm:$0xf0]   ;;  %165 = vst.msk [vmem:[%s452_s1] sm:$0xff] %vm164_vm1, %v163_v41   ;;  %209 = vrot.lane.b32.xlu0 %v208_v47, %s304_s10 }
  0x1d   :  { %v180_v45 = vsel %vm162_vm0, %v178_v43, %v176_v42  ;;  %v167_v46 = vld [vmem:[#allocation0 + $0x40] ss:$8 sm:$0xf]   ;;  %v228_v49 = vld [vmem:[#allocation0 + $0xc1] ss:$8 sm:$0xf0]  }
  0x1e   :  { %298 = vst.msk [vmem:[%s452_s1 + $0x10] sm:$0xff] %vm164_vm1, %v180_v45   ;;  %v169_v48 = vld [vmem:[#allocation0 + $0x40] ss:$8 sm:$0xf0]  }
  0x1f   :  { %v171_v50 = vsel %vm162_vm0, %v169_v48, %v167_v46  ;;  %v187_v51 = vld [vmem:[#allocation0 + $0xc0] ss:$8 sm:$0xf0]   ;;  %v226_v52 = vld [vmem:[#allocation0 + $0xc1] ss:$8 sm:$0xf]  }
  0x20   :  { %297 = vst.msk [vmem:[%s452_s1 + $0x8] sm:$0xff] %vm164_vm1, %v171_v50   ;;  %v185_v53 = vld [vmem:[#allocation0 + $0xc0] ss:$8 sm:$0xf]   ;;  %v230_v54 = vsel %vm162_vm0, %v228_v49, %v226_v52 }
  0x21   :  { %v189_v55 = vsel %vm162_vm0, %v187_v51, %v185_v53  ;;  %231 = vrot.lane.b32.xlu1 %v230_v54, %s304_s10 }
  0x22   :  { %299 = vst.msk [vmem:[%s452_s1 + $0x18] sm:$0xff] %vm164_vm1, %v189_v55  }
  0x87   :  { %v200_v56 = vpop.permute.xlu0 %199  }
  0x88   :  { %202 = vst.msk [vmem:[%s452_s1] sm:$0xff] %vm201_vm2, %v200_v56  }
  0x8c   :  { %v221_v57 = vpop.permute.xlu1 %220  }
  0x8d   :  { %301 = vst.msk [vmem:[%s452_s1 + $0x10] sm:$0xff] %vm201_vm2, %v221_v57  }
  0x8e   :  { %v210_v58 = vpop.permute.xlu0 %209  }
  0x8f   :  { %300 = vst.msk [vmem:[%s452_s1 + $0x8] sm:$0xff] %vm201_vm2, %v210_v58  }
  0x93   :  { %v232_v59 = vpop.permute.xlu1 %231  }
  0x94   :  { %302 = vst.msk [vmem:[%s452_s1 + $0x18] sm:$0xff] %vm201_vm2, %v232_v59  }

// kernel: mistral_block_forward.1
= control target key start
LH: loop header
LB: loop body
LE: loop exit
PB: predicated region body
PF: predicated region fallthrough
CT: control target
= control target key end

     0   :  { %vm46_vm0 = vcmask 523264   ;;  %s4181_s15 = smov 64   ;;  %s4182_s27 = smov 96   ;;  %vm406_vm2 = vcmask 130048   ;;  %s5253_s0 = inlined_call_operand.vmem [shape: f32[2,8,128], index: 0, kind: input, shape index: {}]   ;;  %s5254_s1 = inlined_call_operand.vmem [shape: f32[256,64], index: 1, kind: input, shape index: {}]   ;;  %s5255_s7 = inlined_call_operand.vmem [shape: f32[32,32], index: 7, kind: input, shape index: {}]   ;;  %s5256_s8 = inlined_call_operand.vmem [shape: f32[32,32], index: 8, kind: input, shape index: {}]   ;;  %s5257_s5 = inlined_call_operand.vmem [shape: f32[32,64], index: 5, kind: input, shape index: {}]   ;;  %s5258_s6 = inlined_call_operand.vmem [shape: f32[32,64], index: 6, kind: input, shape index: {}]   ;;  %s5259_s2 = inlined_call_operand.vmem [shape: f32[64,64], index: 2, kind: input, shape index: {}]   ;;  %s5260_s3 = inlined_call_operand.vmem [shape: f32[256,64], index: 3, kind: input, shape index: {}]   ;;  %s5261_s4 = inlined_call_operand.vmem [shape: f32[64,128], index: 4, kind: input, shape index: {}]   ;;  %s5262_s9 = inlined_call_operand.vmem [shape: f32[2,8,128], index: 9, kind: output, shape index: {}]  }
   0x1   :  { %v4242_v0 = vld [vmem:[%s5253_s0] sm:$0xff]  ;;  %v93_v2 = vld [vmem:[%s5254_s1 + $0x88] sm:$0xff]  ;;  %vm4254_vm1 = vmpackc.low %vm46_vm0, %vm46_vm0  ;;  %s4183_s11 = smov 48   ;;  %s4184_s12 = smov 80  }
   0x2   :  { %v92_v1 = vld [vmem:[%s5254_s1 + $0x80] sm:$0xff]  ;;  %35 = vrot.lane.b32.xlu0 %v4242_v0, %s4181_s15  ;;  %v77_v6 = vld [vmem:[%s5254_s1 + $0x8] sm:$0xff]  ;;  %v94_v8 = vld [vmem:[%s5254_s1 + $0x90] sm:$0xff]  ;;  %v42_v28 = vmul.f32 %v4242_v0, %v4242_v0  ;;  %s4185_s16 = smov 112   ;;  %s4188_s14 = smov 32  }
   0x3   :  { %v3595_v3 = vpack.c.bf16 %v93_v2, %v92_v1  ;;  %v76_v5 = vld [vmem:[%s5254_s1] sm:$0xff]  ;;  %v95_v9 = vld [vmem:[%s5254_s1 + $0x98] sm:$0xff]  ;;  %v78_v11 = vld [vmem:[%s5254_s1 + $0x10] sm:$0xff] }
   0x4   :  { %v3598_v7 = vpack.c.bf16 %v77_v6, %v76_v5  ;;  %v3601_v10 = vpack.c.bf16 %v95_v9, %v94_v8  ;;  %v79_v12 = vld [vmem:[%s5254_s1 + $0x18] sm:$0xff]  ;;  %v96_v13 = vld [vmem:[%s5254_s1 + $0xa0] sm:$0xff]  ;;  %v97_v14 = vld [vmem:[%s5254_s1 + $0xa8] sm:$0xff]  ;;  %v47_v30 = vsel %vm46_vm0, %v42_v28, 0.0 }
   0x5   :  { %3597 = vmatprep.subr.msk.bf16.mxu0 %vm4254_vm1, %v3595_v3  ;;  %v3604_v15 = vpack.c.bf16 %v79_v12, %v78_v11  ;;  %v3607_v16 = vpack.c.bf16 %v97_v14, %v96_v13  ;;  %v80_v17 = vld [vmem:[%s5254_s1 + $0x20] sm:$0xff]  ;;  %v81_v18 = vld [vmem:[%s5254_s1 + $0x28] sm:$0xff]  ;;  %v98_v19 = vld [vmem:[%s5254_s1 + $0xb0] sm:$0xff] }
   0x6   :  { %3600 = vmatpush3.bf16.xpose.msk.msra.mxu0 %vm4254_vm1, %v3598_v7  ;;  %v99_v20 = vld [vmem:[%s5254_s1 + $0xb8] sm:$0xff]  ;;  %v3610_v21 = vpack.c.bf16 %v81_v18, %v80_v17  ;;  %v82_v23 = vld [vmem:[%s5254_s1 + $0x30] sm:$0xff]  ;;  %v100_v25 = vld [vmem:[%s5254_s1 + $0xc0] sm:$0xff] }
   0x7   :  { %3603 = vmatprep.subr.msk.bf16.mxu0 %vm4254_vm1, %v3601_v10  ;;  %v3613_v22 = vpack.c.bf16 %v99_v20, %v98_v19  ;;  %v83_v24 = vld [vmem:[%s5254_s1 + $0x38] sm:$0xff]  ;;  %v101_v26 = vld [vmem:[%s5254_s1 + $0xc8] sm:$0xff]  ;;  %v84_v31 = vld [vmem:[%s5254_s1 + $0x40] sm:$0xff] }
   0x8   :  { %v3616_v27 = vpack.c.bf16 %v83_v24, %v82_v23  ;;  %v3619_v29 = vpack.c.bf16 %v101_v26, %v100_v25  ;;  %v85_v32 = vld [vmem:[%s5254_s1 + $0x48] sm:$0xff]  ;;  %v102_v33 = vld [vmem:[%s5254_s1 + $0xd0] sm:$0xff]  ;;  %v103_v34 = vld [vmem:[%s5254_s1 + $0xd8] sm:$0xff] }
   0x9   :  { %v3622_v35 = vpack.c.bf16 %v85_v32, %v84_v31  ;;  %v3625_v36 = vpack.c.bf16 %v103_v34, %v102_v33  ;;  %v86_v37 = vld [vmem:[%s5254_s1 + $0x50] sm:$0xff]  ;;  %v87_v38 = vld [vmem:[%s5254_s1 + $0x58] sm:$0xff]  ;;  %v104_v40 = vld [vmem:[%s5254_s1 + $0xe0] sm:$0xff] }
   0xa   :  { %v3628_v39 = vpack.c.bf16 %v87_v38, %v86_v37  ;;  %v105_v41 = vld [vmem:[%s5254_s1 + $0xe8] sm:$0xff]  ;;  %v88_v42 = vld [vmem:[%s5254_s1 + $0x60] sm:$0xff]  ;;  %v106_v45 = vld [vmem:[%s5254_s1 + $0xf0] sm:$0xff] }
   0xb   :  { %v3631_v43 = vpack.c.bf16 %v105_v41, %v104_v40  ;;  %v89_v44 = vld [vmem:[%s5254_s1 + $0x68] sm:$0xff]  ;;  %v107_v46 = vld [vmem:[%s5254_s1 + $0xf8] sm:$0xff]  ;;  %v90_v49 = vld [vmem:[%s5254_s1 + $0x70] sm:$0xff] }
   0xc   :  { %v3634_v47 = vpack.c.bf16 %v89_v44, %v88_v42  ;;  %v3637_v48 = vpack.c.bf16 %v107_v46, %v106_v45  ;;  %v91_v50 = vld [vmem:[%s5254_s1 + $0x78] sm:$0xff]  ;;  %v325_v55 = vld [vmem:[%s5255_s7] sm:$0xff]  ;;  %v326_v56 = vld [vmem:[%s5255_s7 + $0x8] sm:$0xff] }
   0xd   :  { %v3640_v51 = vpack.c.bf16 %v91_v50, %v90_v49  ;;  %v349_v57 = vld [vmem:[%s5256_s8] sm:$0xff]  ;;  %v350_v58 = vld [vmem:[%s5256_s8 + $0x8] sm:$0xff]  ;;  %vm4449_vm3 = vmpackc.low %vm406_vm2, %vm406_vm2 }
   0xe   :  { %3606 = vmatpush3.bf16.xpose.msk.msra.mxu0 %vm4254_vm1, %v3604_v15  ;;  %v313_v10 = vld [vmem:[%s5258_s6] sm:$0xff]  ;;  %v306_v19 = vld [vmem:[%s5257_s5 + $0x8] sm:$0xff] }
   0xf   :  { %3609 = vmatprep.subr.msk.bf16.mxu0 %vm4254_vm1, %v3607_v16  ;;  %v33_v32 = vld [vmem:[%s5253_s0 + $0x8] sm:$0xff] }
  0x10   :  { %v44_v34 = vmul.f32 %v33_v32, %v33_v32 }
  0x16   :  { %3612 = vmatpush3.bf16.xpose.msk.msra.mxu0 %vm4254_vm1, %v3610_v21  ;;  %v314_v21 = vld [vmem:[%s5258_s6 + $0x8] sm:$0xff] }
  0x17   :  { %3615 = vmatprep.subr.msk.bf16.mxu0 %vm4254_vm1, %v3613_v22 }
  0x1e   :  { %3618 = vmatpush3.bf16.xpose.msk.msra.mxu0 %vm4254_vm1, %v3616_v27 }
  0x1f   :  { %3621 = vmatprep.subr.msk.bf16.mxu0 %vm4254_vm1, %v3619_v29 }
  0x21   :  { %48 = vadd.xlane.f32.xlu0 %v47_v30 }
  0x26   :  { %3624 = vmatpush3.bf16.xpose.msk.msra.mxu0 %vm4254_vm1, %v3622_v35  ;;  %v53_v35 = vsel %vm46_vm0, %v44_v34, 0.0 }
  0x27   :  { %3627 = vmatprep.subr.msk.bf16.mxu0 %vm4254_vm1, %v3625_v36 }
  0x2e   :  { %3630 = vmatpush3.bf16.xpose.msk.msra.mxu0 %vm4254_vm1, %v3628_v39 }
  0x2f   :  { %3633 = vmatprep.subr.msk.bf16.mxu0 %vm4254_vm1, %v3631_v43 }
  0x36   :  { %3636 = vmatpush3.bf16.xpose.msk.msra.mxu0 %vm4254_vm1, %v3634_v47 }
  0x37   :  { %3639 = vmatprep.subr.msk.bf16.mxu0 %vm4254_vm1, %v3637_v48 }
  0x3e   :  { %3642 = vmatpush3.bf16.xpose.msk.msra.mxu0 %vm4254_vm1, %v3640_v51 }
  0x74   :  { %v4383_v52 = vpop.permute.xlu0 %35 }
  0x75   :  { %v43_v53 = vmul.f32 %v4383_v52, %v4383_v52 }
  0x77   :  { %v50_v54 = vsel %vm46_vm0, %v43_v53, 0.0 }
  0x78   :  { %51 = vadd.xlane.f32.xlu1 %v50_v54 }
  0x89   :  { %333 = vrot.lane.b32.xlu1 %v325_v55, %s4181_s15 }
  0x8d   :  { %335 = vrot.lane.b32.xlu1 %v326_v56, %s4181_s15 }
  0x91   :  { %357 = vrot.lane.b32.xlu1 %v349_v57, %s4181_s15 }
  0x95   :  { %359 = vrot.lane.b32.xlu1 %v350_v58, %s4181_s15 }
  0xae   :  { %v49_v59 = vpop.xlane.xlu0 %48 }
  0xaf   :  { %v60_v60 = vmul.f32 0.015625, %v49_v59 }
  0xb1   :  { %v64_v61 = vadd.f32 1e-05, %v60_v60 }
  0xb3   :  { %4083 = vrsqrt.f32 %v64_v61 }
  0xbd   :  { %v4084_v62 = vpop.eup %4083 }
  0xbe   :  { %v72_v63 = vmul.f32 %v4084_v62, %v4242_v0  ;;  %v305_v0 = vld [vmem:[%s5257_s5] sm:$0xff] }
  0xc0   :  { %3129 = vmatprep.mubr.msk.f32.mxu0 %vm46_vm0, %v72_v63 }
  0xc1   :  { %3130 = vmatmul.mubr.msk.f32.vlgmr.msra.gmra.mrb[0].mxu0 %vm46_vm0, %v72_v63 }
 0x105   :  { %v52_v1 = vpop.xlane.xlu1 %51 }
 0x106   :  { %v61_v2 = vmul.f32 0.015625, %v52_v1  ;;  %v377_v1 = vlaneseq }
 0x108   :  { %v65_v3 = vadd.f32 1e-05, %v61_v2  ;;  %v378_v2 = vshrl.u32 %v377_v1, 7 }
 0x109   :  { %v334_v7 = vpop.permute.xlu1 %333 }
 0x10a   :  { %4085 = vrsqrt.f32 %v65_v3  ;;  %v379_v3 = vadd.s32 8, %v378_v2 }
 0x10d   :  { %v336_v8 = vpop.permute.xlu1 %335 }
 0x111   :  { %v358_v9 = vpop.permute.xlu1 %357 }
 0x114   :  { %v4086_v5 = vpop.eup %4085 }
 0x115   :  { %v73_v6 = vmul.f32 %v4086_v5, %v4383_v52  ;;  %v360_v20 = vpop.permute.xlu1 %359  ;;  %v381_v5 = vand.u32 127, %v377_v1 }
 0x117   :  { %3131 = vmatprep.mubr.msk.f32.mxu0 %vm46_vm0, %v73_v6  ;;  %vm383_vm4 = vcmp.ge.s32.totalorder %v379_v3, %v381_v5  ;;  %vm382_vm7 = vcmp.ge.s32.totalorder %v378_v2, %v381_v5 }
 0x118   :  { %3132 = vmatmul.mubr.msk.f32.gmra.mrb[2].mxu0 %vm46_vm0, %v73_v6  ;;  %v385_v6 = vsub.s32 %v379_v3, %v381_v5 }
 0x11a   :  { %vm387_vm5 = vcmp.le.s32.totalorder %v385_v6, 8 }
 0x11b   :  { %vm389_vm6 = vmand %vm383_vm4, %vm387_vm5 }
 0x194   :  { %v282_v11 = vpop.f32.mrb[0].mxu0 }
 0x195   :  { %v284_v12 = vpop.f32.mrb[1].mxu0  ;;  %v309_v13 = vmul.f32 %v305_v0, %v282_v11  ;;  %v345_v14 = vmul.f32 %v334_v7, %v282_v11  ;;  %v4186_v7 = vmov -1e+30  }
 0x196   :  { %v317_v15 = vmul.f32 %v313_v10, %v284_v12  ;;  %v369_v16 = vmul.f32 %v358_v9, %v284_v12  ;;  %v4491_v0 = vsel %vm382_vm7, 0.0, %v4186_v7 }
 0x198   :  { %v4416_v17 = vadd.f32 %v317_v15, %v309_v13  ;;  %v373_v18 = vadd.f32 %v369_v16, %v345_v14 }
 0x19a   :  { %575 = vrot.lane.b32.xlu0 %v4416_v17, %s4182_s27 }
 0x1eb   :  { %v288_v22 = vpop.f32.mrb[2].mxu0 }
 0x1ec   :  { %v290_v23 = vpop.f32.mrb[3].mxu0  ;;  %v310_v24 = vmul.f32 %v306_v19, %v288_v22  ;;  %v346_v25 = vmul.f32 %v336_v8, %v288_v22  ;;  %v4426_v26 = vpack.i.bf16 %v288_v22, %v282_v11  ;;  %v4489_v8 = vsel %vm389_vm6, 0.0, %v4186_v7  ;;  %v351_v22 = vld [vmem:[%s5256_s8 + $0x10] sm:$0xff] }
 0x1ed   :  { %v318_v27 = vmul.f32 %v314_v21, %v290_v23  ;;  %v370_v28 = vmul.f32 %v360_v20, %v290_v23  ;;  %v327_v21 = vld [vmem:[%s5255_s7 + $0x10] sm:$0xff]  ;;  %v352_v23 = vld [vmem:[%s5256_s8 + $0x18] sm:$0xff] }
 0x1ef   :  { %v4428_v29 = vadd.f32 %v318_v27, %v310_v24  ;;  %v374_v30 = vadd.f32 %v370_v28, %v346_v25  ;;  %v328_v24 = vld [vmem:[%s5255_s7 + $0x18] sm:$0xff]  ;;  %v307_v25 = vld [vmem:[%s5257_s5 + $0x10] sm:$0xff] }
 0x1f0   :  { %v315_v27 = vld [vmem:[%s5258_s6 + $0x10] sm:$0xff] }
 0x1f1   :  { %v3983_v31 = vpack.i.bf16 %v374_v30, %v373_v18 }
 0x1f3   :  { %3984 = vrot.lane.b32.xlu1 %v3983_v31, %s4183_s11 }
 0x1f7   :  { %577 = vrot.lane.b32.xlu1 %v4428_v29, %s4182_s27 }
 0x1fb   :  { %666 = vrot.lane.b32.xlu1 %v4416_v17, %s4184_s12 }
 0x1ff   :  { %668 = vrot.lane.b32.xlu1 %v4428_v29, %s4184_s12 }
 0x203   :  { %39 = vrot.lane.b32.xlu1 %v33_v32, %s4181_s15 }
 0x20c   :  { %v576_v33 = vpop.permute.xlu0 %575 }
 0x20d   :  { %3343 = vmatprep.mubr.msk.f32.mxu1 %vm406_vm2, %v576_v33 }
 0x227   :  { %54 = vadd.xlane.f32.xlu1 %v53_v35 }
 0x238   :  { %492 = vrot.lane.b32.xlu1 %v4416_v17, %s4185_s16 }
 0x23c   :  { %494 = vrot.lane.b32.xlu1 %v4428_v29, %s4185_s16 }
 0x265   :  { %v3985_v36 = vpop.permute.xlu1 %3984 }
 0x266   :  { %v3987_v37 = vunpack.i.h.bf16 %v3985_v36  ;;  %v3986_v38 = vunpack.i.l.bf16 %v3985_v36 }
 0x268   :  { %v3655_v40 = vpack.c.bf16 %v3987_v37, %v3986_v38 }
 0x269   :  { %v578_v41 = vpop.permute.xlu1 %577 }
 0x26a   :  { %3657 = vmatprep.subr.msk.bf16.mxu1 %vm4449_vm3, %v3655_v40 }
 0x26b   :  { %3660 = vmatpush3.bf16.xpose.msk.msra.mxu1 %vm4449_vm3, %v3655_v40 }
 0x26c   :  { %3663 = vmatprep.subr.msk.bf16.mxu1 %vm4449_vm3, %v3655_v40 }
 0x26d   :  { %v667_v42 = vpop.permute.xlu1 %666 }
 0x271   :  { %v669_v43 = vpop.permute.xlu1 %668 }
 0x272   :  { %3344 = vmatmul.mubr.msk.f32.vlgmr.msra.gmra.mrb[0].mxu1 %vm406_vm2, %v578_v41 }
 0x273   :  { %3666 = vmatpush3.bf16.xpose.msk.msra.mxu1 %vm4449_vm3, %v3655_v40  ;;  %3350 = vmatprep.mubr.msk.f32.mxu1 %vm406_vm2, %v667_v42 }
 0x275   :  { %v4463_v44 = vpop.permute.xlu1 %39 }
 0x276   :  { %v45_v45 = vmul.f32 %v4463_v44, %v4463_v44 }
 0x278   :  { %v56_v46 = vsel %vm46_vm0, %v45_v45, 0.0 }
 0x279   :  { %57 = vadd.xlane.f32.xlu0 %v56_v46 }
 0x27a   :  { %3351 = vmatmul.mubr.msk.f32.vlgmr.msra.gmra.mrb[2].mxu1 %vm406_vm2, %v669_v43 }
 0x28f   :  { %3989 = vrot.lane.b32.xlu0 %v3983_v31, %s4181_s15 }
 0x2b4   :  { %v55_v47 = vpop.xlane.xlu1 %54 }
 0x2b5   :  { %v62_v48 = vmul.f32 0.015625, %v55_v47 }
 0x2b7   :  { %v66_v49 = vadd.f32 1e-05, %v62_v48 }
 0x2b8   :  { %v493_v62 = vpop.permute.xlu1 %492 }
 0x2b9   :  { %4087 = vrsqrt.f32 %v66_v49 }
 0x2bc   :  { %v495_v63 = vpop.permute.xlu1 %494 }
 0x2c3   :  { %v4088_v50 = vpop.eup %4087 }
 0x2c4   :  { %v74_v51 = vmul.f32 %v4088_v50, %v33_v32 }
 0x2c6   :  { %3133 = vmatprep.mubr.msk.f32.mxu0 %vm46_vm0, %v74_v51 }
 0x2c7   :  { %3134 = vmatmul.mubr.msk.f32.gmra.mrb[4].mxu0 %vm46_vm0, %v74_v51 }
 0x306   :  { %v58_v53 = vpop.xlane.xlu0 %57 }
 0x307   :  { %v63_v54 = vmul.f32 0.015625, %v58_v53 }
 0x309   :  { %v67_v55 = vadd.f32 1e-05, %v63_v54 }
 0x30a   :  { %v3990_v56 = vpop.permute.xlu0 %3989 }
 0x30b   :  { %4089 = vrsqrt.f32 %v67_v55  ;;  %v3992_v57 = vunpack.i.h.bf16 %v3990_v56  ;;  %v3991_v58 = vunpack.i.l.bf16 %v3990_v56 }
 0x30d   :  { %v3643_v59 = vpack.c.bf16 %v3992_v57, %v3991_v58  ;;  %v308_v58 = vld [vmem:[%s5257_s5 + $0x18] sm:$0xff]  ;;  %s4187_s5 = smov 16  }
 0x30f   :  { %3645 = vmatprep.subr.msk.bf16.mxu0 %vm4449_vm3, %v3643_v59 }
 0x310   :  { %3648 = vmatpush3.bf16.xpose.msk.msra.mxu0 %vm4449_vm3, %v3643_v59 }
 0x311   :  { %3651 = vmatprep.subr.msk.bf16.mxu0 %vm4449_vm3, %v3643_v59 }
 0x315   :  { %v4090_v60 = vpop.eup %4089 }
 0x316   :  { %v75_v61 = vmul.f32 %v4090_v60, %v4463_v44 }
 0x318   :  { %3135 = vmatprep.mubr.msk.f32.mxu0 %vm46_vm0, %v75_v61 }
 0x319   :  { %3136 = vmatmul.mubr.msk.f32.gmra.mrb[6].mxu0 %vm46_vm0, %v75_v61 }
 0x31a   :  { %3329 = vmatprep.mubr.msk.f32.mxu0 %vm406_vm2, %v4416_v17 }
 0x31d   :  { %3330 = vmatmul.mubr.msk.f32.vlgmr.msra.gmra.mrb[8].mxu0 %vm406_vm2, %v4428_v29 }
 0x31e   :  { %3654 = vmatpush3.bf16.xpose.msk.msra.mxu0 %vm4449_vm3, %v3643_v59  ;;  %3336 = vmatprep.mubr.msk.f32.mxu0 %vm406_vm2, %v493_v62  ;;  %v316_v59 = vld [vmem:[%s5258_s6 + $0x18] sm:$0xff] }
 0x325   :  { %3337 = vmatmul.mubr.msk.f32.vlgmr.msra.gmra.mrb[10].mxu0 %vm406_vm2, %v495_v63 }
 0x345   :  { %v3345_v9 = vpop.f32.mrb[0].mxu1 }
 0x346   :  { %v754_v10 = vadd.f32 %v3345_v9, %v4489_v8  ;;  %v657_v11 = vpop.f32.mrb[1].mxu1 }
 0x347   :  { %v753_v12 = vadd.f32 %v657_v11, %v4491_v0 }
 0x348   :  { %v772_v13 = vsel %vm406_vm2, %v754_v10, -inf }
 0x349   :  { %773 = vmax.xlane.f32.xlu1 %v772_v13  ;;  %v769_v14 = vsel %vm406_vm2, %v753_v12, -inf }
 0x34a   :  { %770 = vmax.xlane.f32.xlu0 %v769_v14 }
 0x34d   :  { %v3352_v15 = vpop.f32.mrb[2].mxu1 }
 0x34e   :  { %v740_v16 = vpop.f32.mrb[3].mxu1  ;;  %v756_v18 = vadd.f32 %v3352_v15, %v4489_v8 }
 0x34f   :  { %v755_v17 = vadd.f32 %v740_v16, %v4491_v0 }
 0x350   :  { %v778_v20 = vsel %vm406_vm2, %v756_v18, -inf }
 0x351   :  { %v775_v19 = vsel %vm406_vm2, %v755_v17, -inf }
 0x352   :  { %776 = vmax.xlane.f32.xlu0 %v775_v19 }
 0x356   :  { %779 = vmax.xlane.f32.xlu0 %v778_v20 }
 0x35a   :  { %337 = vrot.lane.b32.xlu1 %v327_v21, %s4181_s15 }
 0x35e   :  { %361 = vrot.lane.b32.xlu1 %v351_v22, %s4181_s15 }
 0x362   :  { %363 = vrot.lane.b32.xlu1 %v352_v23, %s4181_s15 }
 0x36c   :  { %339 = vrot.lane.b32.xlu0 %v328_v24, %s4181_s15 }
 0x39a   :  { %v294_v28 = vpop.f32.mrb[4].mxu0 }
 0x39b   :  { %v296_v29 = vpop.f32.mrb[5].mxu0  ;;  %v311_v30 = vmul.f32 %v307_v25, %v294_v28 }
 0x39c   :  { %v319_v31 = vmul.f32 %v315_v27, %v296_v29 }
 0x39e   :  { %v4523_v32 = vadd.f32 %v319_v31, %v311_v30 }
 0x3d6   :  { %v774_v33 = vpop.xlane.xlu1 %773 }
 0x3d7   :  { %v786_v34 = vsub.f32 %v754_v10, %v774_v33  ;;  %v771_v35 = vpop.xlane.xlu0 %770 }
 0x3d8   :  { %v785_v36 = vsub.f32 %v753_v12, %v771_v35 }
 0x3d9   :  { %v799_v37 = vmul.f32 1.442695, %v786_v34 }
 0x3da   :  { %v797_v38 = vmul.f32 1.442695, %v785_v36  ;;  %v338_v40 = vpop.permute.xlu1 %337 }
 0x3db   :  { %4091 = vpow2.f32 %v799_v37  ;;  %v347_v41 = vmul.f32 %v338_v40, %v294_v28 }
 0x3dc   :  { %4093 = vpow2.f32 %v797_v38 }
 0x3de   :  { %v362_v42 = vpop.permute.xlu1 %361 }
 0x3df   :  { %v777_v43 = vpop.xlane.xlu0 %776  ;;  %v371_v45 = vmul.f32 %v362_v42, %v296_v29 }
 0x3e0   :  { %v787_v47 = vsub.f32 %v755_v17, %v777_v43 }
 0x3e1   :  { %v375_v46 = vadd.f32 %v371_v45, %v347_v41 }
 0x3e2   :  { %v801_v53 = vmul.f32 1.442695, %v787_v47  ;;  %v364_v60 = vpop.permute.xlu1 %363 }
 0x3e3   :  { %v780_v48 = vpop.xlane.xlu0 %779 }
 0x3e4   :  { %v788_v49 = vsub.f32 %v756_v18, %v780_v48 }
 0x3e5   :  { %v4525_v50 = vpop.eup %4091 }
 0x3e6   :  { %v4527_v51 = vpop.eup %4093  ;;  %v803_v54 = vmul.f32 1.442695, %v788_v49  ;;  %v820_v55 = vsel %vm406_vm2, %v4525_v50, 0.0 }
 0x3e7   :  { %821 = vadd.xlane.f32.xlu1 %v820_v55  ;;  %v817_v56 = vsel %vm406_vm2, %v4527_v51, 0.0  ;;  %v340_v57 = vpop.permute.xlu0 %339 }
 0x3e8   :  { %4095 = vpow2.f32 %v803_v54  ;;  %818 = vadd.xlane.f32.xlu0 %v817_v56 }
 0x3e9   :  { %4097 = vpow2.f32 %v801_v53 }
 0x3ec   :  { %v300_v61 = vpop.f32.mrb[6].mxu0 }
 0x3ed   :  { %v302_v62 = vpop.f32.mrb[7].mxu0  ;;  %v312_v63 = vmul.f32 %v308_v58, %v300_v61  ;;  %v348_v1 = vmul.f32 %v340_v57, %v300_v61  ;;  %v4539_v2 = vpack.i.bf16 %v300_v61, %v294_v28 }
 0x3ee   :  { %v320_v3 = vmul.f32 %v316_v59, %v302_v62  ;;  %v372_v5 = vmul.f32 %v364_v60, %v302_v62 }
 0x3f0   :  { %v4541_v6 = vadd.f32 %v320_v3, %v312_v63  ;;  %v376_v7 = vadd.f32 %v372_v5, %v348_v1  ;;  %v3331_v9 = vpop.f32.mrb[8].mxu0 }
 0x3f1   :  { %v483_v10 = vpop.f32.mrb[9].mxu0  ;;  %v750_v18 = vadd.f32 %v3331_v9, %v4489_v8 }
 0x3f2   :  { %v4096_v11 = vpop.eup %4095  ;;  %v3998_v12 = vpack.i.bf16 %v376_v7, %v375_v46  ;;  %v4555_v20 = vadd.f32 %v483_v10, %v4491_v0 }
 0x3f3   :  { %v826_v13 = vsel %vm406_vm2, %v4096_v11, 0.0  ;;  %v4098_v14 = vpop.eup %4097  ;;  %v760_v19 = vsel %vm406_vm2, %v750_v18, -inf }
 0x3f4   :  { %827 = vadd.xlane.f32.xlu0 %v826_v13  ;;  %v823_v15 = vsel %vm406_vm2, %v4098_v14, 0.0  ;;  %v757_v22 = vsel %vm406_vm2, %v4555_v20, -inf }
 0x3f8   :  { %v3338_v16 = vpop.f32.mrb[10].mxu0  ;;  %824 = vadd.xlane.f32.xlu0 %v823_v15  ;;  %3994 = vrot.lane.b32.xlu1 %v4426_v26, %s4187_s5 }
 0x3f9   :  { %v566_v17 = vpop.f32.mrb[11].mxu0  ;;  %v4563_v23 = vadd.f32 %v3338_v16, %v4489_v8 }
 0x3fa   :  { %v4558_v21 = vadd.f32 %v566_v17, %v4491_v0 }
 0x3fb   :  { %v766_v25 = vsel %vm406_vm2, %v4563_v23, -inf }
 0x3fc   :  { %1592 = vrot.lane.b32.xlu1 %v4523_v32, %s4185_s16  ;;  %v763_v24 = vsel %vm406_vm2, %v4558_v21, -inf }
 0x400   :  { %1594 = vrot.lane.b32.xlu1 %v4541_v6, %s4185_s16 }
 0x40e   :  { %3999 = vrot.lane.b32.xlu0 %v3998_v12, %s4181_s15 }
 0x424   :  { %761 = vmax.xlane.f32.xlu1 %v760_v19 }
 0x42d   :  { %758 = vmax.xlane.f32.xlu0 %v757_v22 }
 0x431   :  { %764 = vmax.xlane.f32.xlu0 %v763_v24  ;;  %v4646_v24 = vld [vmem:[%s5259_s2 + $0x18] sm:$0xff] }
 0x435   :  { %4004 = vrot.lane.b32.xlu1 %v3998_v12, %s4183_s11  ;;  %767 = vmax.xlane.f32.xlu0 %v766_v25  ;;  %v4651_v25 = vld [vmem:[%s5259_s2 + $0x20] sm:$0xff] }
 0x439   :  { %1677 = vrot.lane.b32.xlu1 %v4541_v6, %s4182_s27 }
 0x43d   :  { %1766 = vrot.lane.b32.xlu1 %v4523_v32, %s4184_s12 }
 0x44b   :  { %1675 = vrot.lane.b32.xlu0 %v4523_v32, %s4182_s27 }
 0x44f   :  { %1768 = vrot.lane.b32.xlu0 %v4541_v6, %s4184_s12 }
 0x474   :  { %v822_v27 = vpop.xlane.xlu1 %821 }
 0x475   :  { %4099 = vrcp.f32 %v822_v27  ;;  %v819_v28 = vpop.xlane.xlu0 %818 }
 0x476   :  { %4101 = vrcp.f32 %v819_v28 }
 0x478   :  { %v3995_v29 = vpop.permute.xlu1 %3994 }
 0x479   :  { %v3997_v30 = vunpack.i.h.bf16 %v3995_v29  ;;  %v3996_v31 = vunpack.i.l.bf16 %v3995_v29 }
 0x47b   :  { %v3719_v33 = vpack.c.bf16 %v3997_v30, %v3996_v31 }
 0x47d   :  { %3720 = vmatprep.subr.bf16.mxu0 %v3719_v33 }
 0x47e   :  { %3722 = vmatpush3.bf16.msra.mxu0 %v3719_v33 }
 0x47f   :  { %v4100_v34 = vpop.eup %4099 }
 0x480   :  { %v4102_v35 = vpop.eup %4101  ;;  %v842_v38 = vmul.f32 %v4100_v34, %v4525_v50  ;;  %v1593_v50 = vpop.permute.xlu1 %1592 }
 0x481   :  { %v828_v36 = vpop.xlane.xlu0 %827  ;;  %v841_v37 = vmul.f32 %v4102_v35, %v4527_v51 }
 0x482   :  { %4103 = vrcp.f32 %v828_v36 }
 0x483   :  { %3405 = vmatprep.mubr.msk.f32.mxu0 %vm406_vm2, %v841_v37 }
 0x484   :  { %3406 = vmatmul.mubr.msk.f32.vlgmr.msra.gmra.mrb[12].mxu0 %vm406_vm2, %v842_v38  ;;  %v1595_v51 = vpop.permute.xlu1 %1594 }
 0x485   :  { %v825_v40 = vpop.xlane.xlu0 %824 }
 0x486   :  { %4105 = vrcp.f32 %v825_v40 }
 0x489   :  { %v4000_v41 = vpop.permute.xlu0 %3999 }
 0x48a   :  { %v4002_v42 = vunpack.i.h.bf16 %v4000_v41  ;;  %v4001_v43 = vunpack.i.l.bf16 %v4000_v41 }
 0x48c   :  { %v3771_v45 = vpack.c.bf16 %v4002_v42, %v4001_v43  ;;  %v4104_v46 = vpop.eup %4103 }
 0x48d   :  { %v844_v49 = vmul.f32 %v4104_v46, %v4096_v11 }
 0x48e   :  { %3773 = vmatprep.subr.msk.bf16.mxu0 %vm4449_vm3, %v3771_v45 }
 0x48f   :  { %3776 = vmatpush3.bf16.xpose.msk.msra.mxu0 %vm4449_vm3, %v3771_v45 }
 0x490   :  { %v4106_v47 = vpop.eup %4105  ;;  %3779 = vmatprep.subr.msk.bf16.mxu0 %vm4449_vm3, %v3771_v45 }
 0x491   :  { %v843_v48 = vmul.f32 %v4106_v47, %v4098_v14 }
 0x493   :  { %3408 = vmatprep.mubr.msk.f32.mxu0 %vm406_vm2, %v843_v48 }
 0x494   :  { %3409 = vmatmul.mubr.msk.f32.gmra.mrb[14].mxu0 %vm406_vm2, %v844_v49 }
 0x495   :  { %3453 = vmatprep.mubr.msk.f32.mxu0 %vm406_vm2, %v4523_v32 }
 0x498   :  { %3454 = vmatmul.mubr.msk.f32.vlgmr.msra.gmra.mrb[16].mxu0 %vm406_vm2, %v4541_v6 }
 0x499   :  { %3782 = vmatpush3.bf16.xpose.msk.msra.mxu0 %vm4449_vm3, %v3771_v45  ;;  %3460 = vmatprep.mubr.msk.f32.mxu0 %vm406_vm2, %v1593_v50 }
 0x4a0   :  { %3461 = vmatmul.mubr.msk.f32.vlgmr.msra.gmra.mrb[18].mxu0 %vm406_vm2, %v1595_v51 }
 0x4b1   :  { %v762_v53 = vpop.xlane.xlu1 %761 }
 0x4b2   :  { %v782_v54 = vsub.f32 %v750_v18, %v762_v53 }
 0x4b4   :  { %v791_v55 = vmul.f32 1.442695, %v782_v54 }
 0x4b5   :  { %v4005_v56 = vpop.permute.xlu1 %4004 }
 0x4b6   :  { %4107 = vpow2.f32 %v791_v55  ;;  %v4007_v57 = vunpack.i.h.bf16 %v4005_v56  ;;  %v4006_v58 = vunpack.i.l.bf16 %v4005_v56 }
 0x4b8   :  { %v3783_v32 = vpack.c.bf16 %v4007_v57, %v4006_v58 }
 0x4b9   :  { %v1678_v6 = vpop.permute.xlu1 %1677 }
 0x4ba   :  { %v759_v59 = vpop.xlane.xlu0 %758  ;;  %3785 = vmatprep.subr.msk.bf16.mxu0 %vm4449_vm3, %v3783_v32 }
 0x4bb   :  { %v781_v60 = vsub.f32 %v4555_v20, %v759_v59  ;;  %3788 = vmatpush3.bf16.xpose.msk.msra.mxu0 %vm4449_vm3, %v3783_v32  ;;  %v4623_v20 = vld [vmem:[%s5259_s2] sm:$0xff] }
 0x4bc   :  { %3791 = vmatprep.subr.msk.bf16.mxu0 %vm4449_vm3, %v3783_v32 }
 0x4bd   :  { %v789_v61 = vmul.f32 1.442695, %v781_v60  ;;  %v1767_v12 = vpop.permute.xlu1 %1766 }
 0x4be   :  { %v765_v62 = vpop.xlane.xlu0 %764 }
 0x4bf   :  { %4109 = vpow2.f32 %v789_v61  ;;  %v783_v63 = vsub.f32 %v4558_v21, %v765_v62  ;;  %v4628_v21 = vld [vmem:[%s5259_s2 + $0x8] sm:$0xff] }
 0x4c0   :  { %v4606_v1 = vpop.eup %4107  ;;  %v4632_v22 = vpack.i.bf16 %v4628_v21, %v4623_v20 }
 0x4c1   :  { %v793_v3 = vmul.f32 1.442695, %v783_v63  ;;  %v808_v5 = vsel %vm406_vm2, %v4606_v1, 0.0 }
 0x4c2   :  { %v768_v7 = vpop.xlane.xlu0 %767  ;;  %809 = vadd.xlane.f32.xlu0 %v808_v5 }
 0x4c3   :  { %4111 = vpow2.f32 %v793_v3  ;;  %v784_v9 = vsub.f32 %v4563_v23, %v768_v7  ;;  %v4641_v23 = vld [vmem:[%s5259_s2 + $0x10] sm:$0xff] }
 0x4c4   :  { %v4655_v27 = vpack.i.bf16 %v4646_v24, %v4641_v23 }
 0x4c5   :  { %v795_v10 = vmul.f32 1.442695, %v784_v9 }
 0x4c6   :  { %v1676_v11 = vpop.permute.xlu0 %1675 }
 0x4c7   :  { %4113 = vpow2.f32 %v795_v10  ;;  %3467 = vmatprep.mubr.msk.f32.mxu0 %vm406_vm2, %v1676_v11 }
 0x4c8   :  { %3468 = vmatmul.mubr.msk.f32.vlgmr.msra.gmra.mrb[20].mxu0 %vm406_vm2, %v1678_v6 }
 0x4c9   :  { %v4110_v13 = vpop.eup %4109  ;;  %3794 = vmatpush3.bf16.xpose.msk.msra.mxu0 %vm4449_vm3, %v3783_v32  ;;  %3474 = vmatprep.mubr.msk.f32.mxu0 %vm406_vm2, %v1767_v12 }
 0x4ca   :  { %v805_v14 = vsel %vm406_vm2, %v4110_v13, 0.0  ;;  %v1769_v17 = vpop.permute.xlu0 %1768 }
 0x4cb   :  { %806 = vadd.xlane.f32.xlu1 %v805_v14 }
 0x4cd   :  { %v4112_v15 = vpop.eup %4111 }
 0x4ce   :  { %v811_v16 = vsel %vm406_vm2, %v4112_v15, 0.0 }
 0x4cf   :  { %812 = vadd.xlane.f32.xlu0 %v811_v16 }
 0x4d0   :  { %3475 = vmatmul.mubr.msk.f32.vlgmr.msra.gmra.mrb[22].mxu0 %vm406_vm2, %v1769_v17 }
 0x4d1   :  { %v4114_v18 = vpop.eup %4113 }
 0x4d2   :  { %v814_v19 = vsel %vm406_vm2, %v4114_v18, 0.0 }
 0x4d3   :  { %815 = vadd.xlane.f32.xlu1 %v814_v19 }
 0x4e4   :  { %4014 = vrot.lane.b32.xlu1 %v4632_v22, %s4185_s16 }
 0x4e5   :  { %4009 = vrot.lane.b32.xlu0 %v4426_v26, %s4188_s14  ;;  %v4660_v26 = vld [vmem:[%s5259_s2 + $0x28] sm:$0xff] }
 0x4e6   :  { %v4666_v28 = vpack.i.bf16 %v4660_v26, %v4651_v25 }
 0x4e9   :  { %4019 = vrot.lane.b32.xlu0 %v4655_v27, %s4185_s16 }
 0x4ed   :  { %4024 = vrot.lane.b32.xlu0 %v4666_v28, %s4185_s16 }
 0x54f   :  { %v810_v29 = vpop.xlane.xlu0 %809 }
 0x557   :  { %v4670_v30 = vpop.f32.mrb[12].mxu0 }
 0x558   :  { %v807_v31 = vpop.xlane.xlu1 %806  ;;  %v4672_v33 = vpop.f32.mrb[13].mxu0 }
 0x559   :  { %4115 = vrcp.f32 %v807_v31 }
 0x55a   :  { %4117 = vrcp.f32 %v810_v29 }
 0x55c   :  { %v813_v34 = vpop.xlane.xlu0 %812 }
 0x55d   :  { %4119 = vrcp.f32 %v813_v34 }
 0x560   :  { %v4010_v35 = vpop.permute.xlu0 %4009  ;;  %v816_v36 = vpop.xlane.xlu1 %815 }
 0x561   :  { %v4012_v37 = vunpack.i.h.bf16 %v4010_v35  ;;  %v4011_v38 = vunpack.i.l.bf16 %v4010_v35  ;;  %4121 = vrcp.f32 %v816_v36  ;;  %v4725_v36 = vld [vmem:[%s5259_s2 + $0x30] sm:$0xff] }
 0x563   :  { %v4116_v40 = vpop.eup %4115  ;;  %v3667_v41 = vpack.c.bf16 %v4012_v37, %v4011_v38  ;;  %v4730_v37 = vld [vmem:[%s5259_s2 + $0x38] sm:$0xff] }
 0x564   :  { %v4118_v42 = vpop.eup %4117  ;;  %v837_v43 = vmul.f32 %v4116_v40, %v4110_v13  ;;  %v4015_v45 = vpop.permute.xlu1 %4014  ;;  %v4736_v38 = vpack.i.bf16 %v4730_v37, %v4725_v36 }
 0x565   :  { %3668 = vmatprep.subr.bf16.mxu1 %v3667_v41  ;;  %v4017_v46 = vunpack.i.h.bf16 %v4015_v45  ;;  %v4016_v47 = vunpack.i.l.bf16 %v4015_v45  ;;  %v838_v49 = vmul.f32 %v4118_v42, %v4606_v1  ;;  %v4020_v7 = vpop.permute.xlu0 %4019 }
 0x566   :  { %3670 = vmatpush3.bf16.msra.mxu1 %v3667_v41  ;;  %3357 = vmatprep.mubr.msk.f32.mxu1 %vm406_vm2, %v837_v43  ;;  %v4022_v9 = vunpack.i.h.bf16 %v4020_v7  ;;  %v4021_v10 = vunpack.i.l.bf16 %v4020_v7 }
 0x567   :  { %v4120_v48 = vpop.eup %4119  ;;  %v4676_v50 = vpop.f32.mrb[14].mxu0  ;;  %v4678_v51 = vpack.c.bf16 %v4017_v46, %v4016_v47 }
 0x568   :  { %v4680_v53 = vpop.f32.mrb[15].mxu0  ;;  %v839_v54 = vmul.f32 %v4120_v48, %v4112_v15  ;;  %v4699_v11 = vpack.c.bf16 %v4022_v9, %v4021_v10 }
 0x569   :  { %3358 = vmatmul.mubr.msk.f32.vlgmr.msra.gmra.mrb[4].mxu1 %vm406_vm2, %v838_v49  ;;  %3673 = vmatprep.subr.msk.bf16.mxu1 %vm4449_vm3, %v4678_v51  ;;  %v4025_v12 = vpop.permute.xlu0 %4024 }
 0x56a   :  { %3360 = vmatprep.mubr.msk.f32.mxu1 %vm406_vm2, %v839_v54  ;;  %v4027_v13 = vunpack.i.h.bf16 %v4025_v12  ;;  %v4026_v14 = vunpack.i.l.bf16 %v4025_v12 }
 0x56b   :  { %v4122_v55 = vpop.eup %4121  ;;  %v3455_v56 = vpop.f32.mrb[16].mxu0 }
 0x56c   :  { %v1850_v57 = vadd.f32 %v3455_v56, %v4489_v8  ;;  %v1583_v58 = vpop.f32.mrb[17].mxu0  ;;  %v840_v32 = vmul.f32 %v4122_v55, %v4114_v18  ;;  %v4707_v15 = vpack.c.bf16 %v4027_v13, %v4026_v14 }
 0x56d   :  { %v1849_v59 = vadd.f32 %v1583_v58, %v4491_v0 }
 0x56e   :  { %3361 = vmatmul.mubr.msk.f32.gmra.mrb[6].mxu1 %vm406_vm2, %v840_v32  ;;  %v1860_v60 = vsel %vm406_vm2, %v1850_v57, -inf }
 0x56f   :  { %1861 = vmax.xlane.f32.xlu1 %v1860_v60  ;;  %3676 = vmatpush3.bf16.xpose.msk.msra.mxu1 %vm4449_vm3, %v4678_v51  ;;  %v1857_v61 = vsel %vm406_vm2, %v1849_v59, -inf }
 0x570   :  { %3679 = vmatprep.subr.msk.bf16.mxu1 %vm4449_vm3, %v4699_v11 }
 0x573   :  { %v3462_v62 = vpop.f32.mrb[18].mxu0  ;;  %1858 = vmax.xlane.f32.xlu1 %v1857_v61 }
 0x574   :  { %v1852_v63 = vadd.f32 %v3462_v62, %v4489_v8  ;;  %v1666_v1 = vpop.f32.mrb[19].mxu0 }
 0x575   :  { %v1851_v3 = vadd.f32 %v1666_v1, %v4491_v0 }
 0x576   :  { %v1866_v5 = vsel %vm406_vm2, %v1852_v63, -inf }
 0x577   :  { %1867 = vmax.xlane.f32.xlu1 %v1866_v5  ;;  %v1863_v6 = vsel %vm406_vm2, %v1851_v3, -inf  ;;  %3682 = vmatpush3.bf16.xpose.msk.msra.mxu1 %vm4449_vm3, %v4699_v11 }
 0x578   :  { %3685 = vmatprep.subr.msk.bf16.mxu1 %vm4449_vm3, %v4707_v15 }
 0x57b   :  { %1864 = vmax.xlane.f32.xlu1 %v1863_v6 }
 0x57f   :  { %3688 = vmatpush3.bf16.xpose.msk.msra.mxu1 %vm4449_vm3, %v4707_v15 }
 0x59b   :  { %v3469_v16 = vpop.f32.mrb[20].mxu0 }
 0x59c   :  { %v1854_v17 = vadd.f32 %v3469_v16, %v4489_v8  ;;  %v1757_v18 = vpop.f32.mrb[21].mxu0 }
 0x59d   :  { %v4717_v19 = vadd.f32 %v1757_v18, %v4491_v0 }
 0x59e   :  { %v1872_v29 = vsel %vm406_vm2, %v1854_v17, -inf }
 0x59f   :  { %1873 = vmax.xlane.f32.xlu1 %v1872_v29  ;;  %v1869_v31 = vsel %vm406_vm2, %v4717_v19, -inf  ;;  %v4782_v29 = vpack.c.bf16 %v4628_v21, %v4623_v20 }
 0x5a0   :  { %1870 = vmax.xlane.f32.xlu0 %v1869_v31 }
 0x5a3   :  { %v3476_v34 = vpop.f32.mrb[22].mxu0 }
 0x5a4   :  { %v1840_v35 = vpop.f32.mrb[23].mxu0  ;;  %v4750_v42 = vadd.f32 %v3476_v34, %v4489_v8 }
 0x5a5   :  { %v4745_v40 = vadd.f32 %v1840_v35, %v4491_v0  ;;  %v4804_v35 = vpack.c.bf16 %v4646_v24, %v4641_v23  ;;  %v4818_v23 = vpack.c.bf16 %v4660_v26, %v4651_v25  ;;  %v4828_v24 = vpack.c.bf16 %v4730_v37, %v4725_v36 }
 0x5a6   :  { %v1878_v43 = vsel %vm406_vm2, %v4750_v42, -inf }
 0x5a7   :  { %v1875_v41 = vsel %vm406_vm2, %v4745_v40, -inf }
 0x5b0   :  { %4034 = vrot.lane.b32.xlu1 %v4539_v2, %s4188_s14 }
 0x5b4   :  { %4039 = vrot.lane.b32.xlu1 %v4632_v22, %s4182_s27 }
 0x5b6   :  { %4029 = vrot.lane.b32.xlu0 %v4736_v38, %s4185_s16 }
 0x5b8   :  { %4044 = vrot.lane.b32.xlu1 %v4655_v27, %s4182_s27 }
 0x5d5   :  { %1876 = vmax.xlane.f32.xlu0 %v1875_v41 }
 0x5dc   :  { %1879 = vmax.xlane.f32.xlu1 %v1878_v43 }
 0x5eb   :  { %4049 = vrot.lane.b32.xlu0 %v4666_v28, %s4182_s27 }
 0x5ed   :  { %4054 = vrot.lane.b32.xlu1 %v4736_v38, %s4182_s27 }
 0x5f1   :  { %4059 = vrot.lane.b32.xlu1 %v4632_v22, %s4184_s12 }
 0x5f5   :  { %4064 = vrot.lane.b32.xlu1 %v4655_v27, %s4184_s12 }
 0x5fc   :  { %v1862_v0 = vpop.xlane.xlu1 %1861 }
 0x5fd   :  { %v1882_v8 = vsub.f32 %v1850_v57, %v1862_v0 }
 0x5ff   :  { %v1891_v47 = vmul.f32 1.442695, %v1882_v8 }
 0x600   :  { %v1859_v45 = vpop.xlane.xlu1 %1858 }
 0x601   :  { %v1881_v48 = vsub.f32 %v1849_v59, %v1859_v45  ;;  %4123 = vpow2.f32 %v1891_v47 }
 0x603   :  { %v1889_v49 = vmul.f32 1.442695, %v1881_v48 }
 0x604   :  { %v1868_v46 = vpop.xlane.xlu1 %1867 }
 0x605   :  { %v1884_v54 = vsub.f32 %v1852_v63, %v1868_v46  ;;  %4125 = vpow2.f32 %v1889_v49 }
 0x607   :  { %v1895_v56 = vmul.f32 1.442695, %v1884_v54 }
 0x608   :  { %v1865_v55 = vpop.xlane.xlu1 %1864 }
 0x609   :  { %v1883_v58 = vsub.f32 %v1851_v3, %v1865_v55  ;;  %4127 = vpow2.f32 %v1895_v56 }
 0x60b   :  { %v1893_v32 = vmul.f32 1.442695, %v1883_v58  ;;  %v4762_v60 = vpop.eup %4123 }
 0x60c   :  { %v1908_v22 = vsel %vm406_vm2, %v4762_v60, 0.0 }
 0x60d   :  { %4129 = vpow2.f32 %v1893_v32 }
 0x60f   :  { %v4766_v27 = vpop.eup %4125 }
 0x610   :  { %v1905_v57 = vsel %vm406_vm2, %v4766_v27, 0.0 }
 0x613   :  { %v4770_v59 = vpop.eup %4127 }
 0x614   :  { %v1914_v61 = vsel %vm406_vm2, %v4770_v59, 0.0 }
 0x617   :  { %v4774_v62 = vpop.eup %4129 }
 0x618   :  { %v1911_v63 = vsel %vm406_vm2, %v4774_v62, 0.0 }
 0x619   :  { %1909 = vadd.xlane.f32.xlu1 %v1908_v22 }
 0x61d   :  { %1906 = vadd.xlane.f32.xlu1 %v1905_v57 }
 0x621   :  { %1915 = vadd.xlane.f32.xlu1 %v1914_v61 }
 0x625   :  { %1912 = vadd.xlane.f32.xlu1 %v1911_v63 }
 0x62c   :  { %v1874_v1 = vpop.xlane.xlu1 %1873 }
 0x62d   :  { %v1886_v3 = vsub.f32 %v1854_v17, %v1874_v1  ;;  %v1871_v5 = vpop.xlane.xlu0 %1870 }
 0x62e   :  { %v1885_v41 = vsub.f32 %v4717_v19, %v1871_v5 }
 0x62f   :  { %v1899_v6 = vmul.f32 1.442695, %v1886_v3 }
 0x630   :  { %v4035_v7 = vpop.permute.xlu1 %4034  ;;  %v1897_v43 = vmul.f32 1.442695, %v1885_v41 }
 0x631   :  { %4131 = vpow2.f32 %v1899_v6  ;;  %v4037_v9 = vunpack.i.h.bf16 %v4035_v7  ;;  %v4036_v10 = vunpack.i.l.bf16 %v4035_v7  ;;  %v4030_v12 = vpop.permute.xlu0 %4029 }
 0x632   :  { %v4032_v13 = vunpack.i.h.bf16 %v4030_v12  ;;  %v4031_v14 = vunpack.i.l.bf16 %v4030_v12  ;;  %4133 = vpow2.f32 %v1897_v43 }
 0x633   :  { %v3795_v16 = vpack.c.bf16 %v4037_v9, %v4036_v10 }
 0x634   :  { %v4778_v18 = vpack.c.bf16 %v4032_v13, %v4031_v14  ;;  %v4040_v19 = vpop.permute.xlu1 %4039 }
 0x635   :  { %3796 = vmatprep.subr.bf16.mxu0 %v3795_v16  ;;  %v4042_v26 = vunpack.i.h.bf16 %v4040_v19  ;;  %v4041_v0 = vunpack.i.l.bf16 %v4040_v19 }
 0x636   :  { %3798 = vmatpush3.bf16.msra.mxu0 %v3795_v16  ;;  %4069 = vrot.lane.b32.xlu1 %v4666_v28, %s4184_s12 }
 0x637   :  { %3801 = vmatprep.subr.msk.bf16.mxu0 %vm4449_vm3, %v4678_v51  ;;  %3691 = vmatprep.subr.msk.bf16.mxu1 %vm4449_vm3, %v4778_v18  ;;  %v4842_v37 = vpack.c.bf16 %v4042_v26, %v4041_v0 }
 0x638   :  { %3694 = vmatpush3.bf16.xpose.msk.msra.mxu1 %vm4449_vm3, %v4778_v18 }
 0x639   :  { %3697 = vmatprep.subr.msk.bf16.mxu1 %vm4449_vm3, %v4782_v29 }
 0x63b   :  { %v4798_v20 = vpop.eup %4131 }
 0x63c   :  { %v3359_v21 = vpop.f32.mrb[4].mxu1  ;;  %v1920_v28 = vsel %vm406_vm2, %v4798_v20, 0.0  ;;  %v4835_v25 = vpop.eup %4133 }
 0x63d   :  { %v931_v17 = vpop.f32.mrb[5].mxu1  ;;  %1921 = vadd.xlane.f32.xlu0 %v1920_v28  ;;  %v1917_v36 = vsel %vm406_vm2, %v4835_v25, 0.0 }
 0x641   :  { %v3362_v31 = vpop.f32.mrb[6].mxu1 }
 0x642   :  { %v941_v34 = vpop.f32.mrb[7].mxu1 }
 0x643   :  { %3379 = vmatprep.mubr.msk.f32.mxu1 %vm406_vm2, %v941_v34 }
 0x644   :  { %3380 = vmatmul.mubr.msk.f32.vlgmr.msra.gmra.mrb[8].mxu1 %vm406_vm2, %v3362_v31 }
 0x645   :  { %3700 = vmatpush3.bf16.xpose.msk.msra.mxu1 %vm4449_vm3, %v4782_v29  ;;  %3398 = vmatprep.mubr.msk.f32.mxu1 %vm406_vm2, %v931_v17 }
 0x646   :  { %3703 = vmatprep.subr.msk.bf16.mxu1 %vm4449_vm3, %v4804_v35 }
 0x64d   :  { %3706 = vmatpush3.bf16.xpose.msk.msra.mxu1 %vm4449_vm3, %v4804_v35 }
 0x64e   :  { %3709 = vmatprep.subr.msk.bf16.mxu1 %vm4449_vm3, %v4818_v23 }
 0x653   :  { %4074 = vrot.lane.b32.xlu0 %v4736_v38, %s4184_s12  ;;  %v4045_v38 = vpop.permute.xlu1 %4044 }
 0x654   :  { %v4047_v45 = vunpack.i.h.bf16 %v4045_v38  ;;  %v4046_v8 = vunpack.i.l.bf16 %v4045_v38 }
 0x655   :  { %3712 = vmatpush3.bf16.xpose.msk.msra.mxu1 %vm4449_vm3, %v4818_v23 }
 0x656   :  { %3715 = vmatprep.subr.msk.bf16.mxu1 %vm4449_vm3, %v4828_v24  ;;  %v4850_v47 = vpack.c.bf16 %v4047_v45, %v4046_v8 }
 0x65a   :  { %1918 = vadd.xlane.f32.xlu1 %v1917_v36 }
 0x65d   :  { %3718 = vmatpush3.bf16.xpose.msk.msra.mxu1 %vm4449_vm3, %v4828_v24 }
 0x65e   :  { %3725 = vmatprep.subr.msk.bf16.mxu1 %vm4449_vm3, %v4842_v37 }
 0x662   :  { %v1877_v46 = vpop.xlane.xlu0 %1876 }
 0x663   :  { %v1887_v3 = vsub.f32 %v4745_v40, %v1877_v46 }
 0x664   :  { %3399 = vmatmul.mubr.msk.f32.vlgmr.msra.gmra.mrb[8].mxu1 %vm406_vm2, %v3359_v21 }
 0x665   :  { %3728 = vmatpush3.bf16.xpose.msk.msra.mxu1 %vm4449_vm3, %v4842_v37  ;;  %3427 = vmatprep.mubr.msk.f32.mxu1 %vm406_vm2, %v4672_v33  ;;  %v1901_v7 = vmul.f32 1.442695, %v1887_v3  ;;  %v2536_v3 = vld [vmem:[%s5260_s3 + $0x98] sm:$0xff] }
 0x666   :  { %3731 = vmatprep.subr.msk.bf16.mxu1 %vm4449_vm3, %v4850_v47  ;;  %v4050_v48 = vpop.permute.xlu0 %4049 }
 0x667   :  { %v4052_v49 = vunpack.i.h.bf16 %v4050_v48  ;;  %v4051_v54 = vunpack.i.l.bf16 %v4050_v48 }
 0x669   :  { %v1880_v55 = vpop.xlane.xlu1 %1879  ;;  %v4862_v58 = vpack.c.bf16 %v4052_v49, %v4051_v54 }
 0x66a   :  { %v1888_v56 = vsub.f32 %v4750_v42, %v1880_v55 }
 0x66b   :  { %4079 = vrot.lane.b32.xlu1 %v4539_v2, %s4187_s5 }
 0x66c   :  { %v1903_v32 = vmul.f32 1.442695, %v1888_v56 }
 0x66d   :  { %3734 = vmatpush3.bf16.xpose.msk.msra.mxu1 %vm4449_vm3, %v4850_v47  ;;  %v4055_v33 = vpop.permute.xlu1 %4054 }
 0x66e   :  { %4135 = vpow2.f32 %v1903_v32  ;;  %3737 = vmatprep.subr.msk.bf16.mxu1 %vm4449_vm3, %v4862_v58  ;;  %v4057_v22 = vunpack.i.h.bf16 %v4055_v33  ;;  %v4056_v57 = vunpack.i.l.bf16 %v4055_v33 }
 0x66f   :  { %4137 = vpow2.f32 %v1901_v7 }
 0x670   :  { %v4872_v61 = vpack.c.bf16 %v4057_v22, %v4056_v57 }
 0x671   :  { %v4060_v42 = vpop.permute.xlu1 %4059 }
 0x672   :  { %v4062_v63 = vunpack.i.h.bf16 %v4060_v42  ;;  %v4061_v1 = vunpack.i.l.bf16 %v4060_v42  ;;  %v2517_v42 = vld [vmem:[%s5260_s3] sm:$0xff] }
 0x674   :  { %v4885_v6 = vpack.c.bf16 %v4062_v63, %v4061_v1  ;;  %v2535_v1 = vld [vmem:[%s5260_s3 + $0x90] sm:$0xff] }
 0x675   :  { %3740 = vmatpush3.bf16.xpose.msk.msra.mxu1 %vm4449_vm3, %v4862_v58  ;;  %v4065_v9 = vpop.permute.xlu1 %4064  ;;  %v3905_v7 = vpack.c.bf16 %v2536_v3, %v2535_v1 }
 0x676   :  { %3743 = vmatprep.subr.msk.bf16.mxu1 %vm4449_vm3, %v4872_v61  ;;  %v4067_v10 = vunpack.i.h.bf16 %v4065_v9  ;;  %v4066_v12 = vunpack.i.l.bf16 %v4065_v9  ;;  %v2519_v9 = vld [vmem:[%s5260_s3 + $0x10] sm:$0xff] }
 0x678   :  { %v4880_v2 = vpop.eup %4135  ;;  %v4893_v40 = vpack.c.bf16 %v4067_v10, %v4066_v12  ;;  %v2520_v10 = vld [vmem:[%s5260_s3 + $0x18] sm:$0xff]  ;;  %v2537_v12 = vld [vmem:[%s5260_s3 + $0xa0] sm:$0xff] }
 0x679   :  { %v1926_v5 = vsel %vm406_vm2, %v4880_v2, 0.0  ;;  %v4905_v13 = vpop.eup %4137 }
 0x67a   :  { %1927 = vadd.xlane.f32.xlu0 %v1926_v5 }
 0x67d   :  { %3746 = vmatpush3.bf16.xpose.msk.msra.mxu1 %vm4449_vm3, %v4872_v61 }
 0x67e   :  { %3749 = vmatprep.subr.msk.bf16.mxu1 %vm4449_vm3, %v4885_v6 }
 0x684   :  { %3428 = vmatmul.mubr.msk.f32.vlgmr.msra.gmra.mrb[8].mxu1 %vm406_vm2, %v4670_v30  ;;  %v1923_v30 = vsel %vm406_vm2, %v4905_v13, 0.0 }
 0x685   :  { %3752 = vmatpush3.bf16.xpose.msk.msra.mxu1 %vm4449_vm3, %v4885_v6  ;;  %3446 = vmatprep.mubr.msk.f32.mxu1 %vm406_vm2, %v4680_v53 }
 0x686   :  { %3755 = vmatprep.subr.msk.bf16.mxu1 %vm4449_vm3, %v4893_v40 }
 0x68d   :  { %3758 = vmatpush3.bf16.xpose.msk.msra.mxu1 %vm4449_vm3, %v4893_v40 }
 0x68f   :  { %1924 = vadd.xlane.f32.xlu1 %v1923_v30  ;;  %v3908_v30 = vpack.c.bf16 %v2520_v10, %v2519_v9 }
 0x6a6   :  { %v1910_v14 = vpop.xlane.xlu1 %1909 }
 0x6a7   :  { %4139 = vrcp.f32 %v1910_v14 }
 0x6aa   :  { %v1907_v16 = vpop.xlane.xlu1 %1906 }
 0x6ab   :  { %4141 = vrcp.f32 %v1907_v16 }
 0x6ae   :  { %v1916_v21 = vpop.xlane.xlu1 %1915 }
 0x6af   :  { %4143 = vrcp.f32 %v1916_v21 }
 0x6b1   :  { %v4140_v28 = vpop.eup %4139 }
 0x6b2   :  { %v1913_v53 = vpop.xlane.xlu1 %1912  ;;  %v1938_v41 = vmul.f32 %v4140_v28, %v4762_v60  ;;  %v2522_v28 = vld [vmem:[%s5260_s3 + $0x28] sm:$0xff] }
 0x6b3   :  { %4145 = vrcp.f32 %v1913_v53  ;;  %v2521_v53 = vld [vmem:[%s5260_s3 + $0x20] sm:$0xff] }
 0x6b5   :  { %v4142_v17 = vpop.eup %4141 }
 0x6b6   :  { %v4070_v31 = vpop.permute.xlu1 %4069  ;;  %v1937_v34 = vmul.f32 %v4142_v17, %v4766_v27  ;;  %v2539_v17 = vld [vmem:[%s5260_s3 + $0xb0] sm:$0xff] }
 0x6b7   :  { %v4072_v43 = vunpack.i.h.bf16 %v4070_v31  ;;  %v4071_v19 = vunpack.i.l.bf16 %v4070_v31  ;;  %v2540_v31 = vld [vmem:[%s5260_s3 + $0xb8] sm:$0xff] }
 0x6b8   :  { %3481 = vmatprep.mubr.msk.f32.mxu0 %vm406_vm2, %v1937_v34  ;;  %v3914_v34 = vpack.c.bf16 %v2522_v28, %v2521_v53  ;;  %v4180_v28 = vld [vmem:[%s5253_s0 + $0x8] sm:$0xff] }
 0x6b9   :  { %v4915_v26 = vpack.c.bf16 %v4072_v43, %v4071_v19  ;;  %3482 = vmatmul.mubr.msk.f32.vlgmr.msra.gmra.mrb[24].mxu0 %vm406_vm2, %v1938_v41  ;;  %v4144_v60 = vpop.eup %4143  ;;  %v3917_v41 = vpack.c.bf16 %v2540_v31, %v2539_v17 }
 0x6ba   :  { %3804 = vmatpush3.bf16.xpose.msk.msra.mxu0 %vm4449_vm3, %v4678_v51  ;;  %v1940_v36 = vmul.f32 %v4144_v60, %v4770_v59  ;;  %v2523_v60 = vld [vmem:[%s5260_s3 + $0x30] sm:$0xff] }
 0x6bb   :  { %3807 = vmatprep.subr.msk.bf16.mxu0 %vm4449_vm3, %v4699_v11  ;;  %3761 = vmatprep.subr.msk.bf16.mxu1 %vm4449_vm3, %v4915_v26 }
 0x6bc   :  { %3764 = vmatpush3.bf16.xpose.msk.msra.mxu1 %vm4449_vm3, %v4915_v26 }
 0x6bd   :  { %v4146_v27 = vpop.eup %4145 }
 0x6be   :  { %v1939_v0 = vmul.f32 %v4146_v27, %v4774_v62  ;;  %v2524_v27 = vld [vmem:[%s5260_s3 + $0x38] sm:$0xff] }
 0x6c0   :  { %3484 = vmatprep.mubr.msk.f32.mxu0 %vm406_vm2, %v1939_v0  ;;  %v2541_v0 = vld [vmem:[%s5260_s3 + $0xc0] sm:$0xff] }
 0x6c1   :  { %3485 = vmatmul.mubr.msk.f32.gmra.mrb[26].mxu0 %vm406_vm2, %v1940_v36  ;;  %v2542_v36 = vld [vmem:[%s5260_s3 + $0xc8] sm:$0xff] }
 0x6c2   :  { %3810 = vmatpush3.bf16.xpose.msk.msra.mxu0 %vm4449_vm3, %v4699_v11 }
 0x6c3   :  { %3813 = vmatprep.subr.msk.bf16.mxu0 %vm4449_vm3, %v4707_v15 }
 0x6ca   :  { %3816 = vmatpush3.bf16.xpose.msk.msra.mxu0 %vm4449_vm3, %v4707_v15  ;;  %v1922_v51 = vpop.xlane.xlu0 %1921 }
 0x6cb   :  { %3819 = vmatprep.subr.msk.bf16.mxu0 %vm4449_vm3, %v4778_v18  ;;  %4147 = vrcp.f32 %v1922_v51  ;;  %v3920_v51 = vpack.c.bf16 %v2524_v27, %v2523_v60  ;;  %v2782_v27 = vld [vmem:[%s5261_s4 + $0x20] sm:$0xff] }
 0x6ce   :  { %v4075_v59 = vpop.permute.xlu0 %4074 }
 0x6cf   :  { %v4077_v62 = vunpack.i.h.bf16 %v4075_v59  ;;  %v4076_v38 = vunpack.i.l.bf16 %v4075_v59  ;;  %v3923_v59 = vpack.c.bf16 %v2542_v36, %v2541_v0  ;;  %v2783_v0 = vld [vmem:[%s5261_s4 + $0x28] sm:$0xff] }
 0x6d0   :  { %v3955_v36 = vpack.c.bf16 %v2783_v0, %v2782_v27 }
 0x6d1   :  { %v4946_v45 = vpack.c.bf16 %v4077_v62, %v4076_v38  ;;  %v2526_v62 = vld [vmem:[%s5260_s3 + $0x48] sm:$0xff]  ;;  %v2543_v38 = vld [vmem:[%s5260_s3 + $0xd0] sm:$0xff] }
 0x6d2   :  { %3822 = vmatpush3.bf16.xpose.msk.msra.mxu0 %vm4449_vm3, %v4778_v18 }
 0x6d3   :  { %3767 = vmatprep.subr.msk.bf16.mxu1 %vm4449_vm3, %v4946_v45  ;;  %3825 = vmatprep.subr.msk.bf16.mxu0 %vm4449_vm3, %v4782_v29 }
 0x6d4   :  { %3770 = vmatpush3.bf16.xpose.msk.msra.mxu1 %vm4449_vm3, %v4946_v45 }
 0x6d5   :  { %v4148_v48 = vpop.eup %4147 }
 0x6d6   :  { %v1942_v55 = vmul.f32 %v4148_v48, %v4798_v20  ;;  %v2533_v20 = vld [vmem:[%s5260_s3 + $0x80] sm:$0xff] }
 0x6db   :  { %3447 = vmatmul.mubr.msk.f32.vlgmr.msra.gmra.mrb[8].mxu1 %vm406_vm2, %v4676_v50 }
 0x6e7   :  { %v1919_v11 = vpop.xlane.xlu1 %1918 }
 0x6e8   :  { %4149 = vrcp.f32 %v1919_v11  ;;  %v2544_v11 = vld [vmem:[%s5260_s3 + $0xd8] sm:$0xff] }
 0x6eb   :  { %v4080_v15 = vpop.permute.xlu1 %4079 }
 0x6ec   :  { %v4082_v18 = vunpack.i.h.bf16 %v4080_v15  ;;  %v4081_v8 = vunpack.i.l.bf16 %v4080_v15 }
 0x6ee   :  { %v3847_v46 = vpack.c.bf16 %v4082_v18, %v4081_v8  ;;  %v3929_v18 = vpack.c.bf16 %v2544_v11, %v2543_v38  ;;  %v2528_v8 = vld [vmem:[%s5260_s3 + $0x58] sm:$0xff] }
 0x6f0   :  { %3848 = vmatprep.subr.bf16.mxu1 %v3847_v46 }
 0x6f1   :  { %3850 = vmatpush3.bf16.msra.mxu1 %v3847_v46 }
 0x6f2   :  { %v4150_v49 = vpop.eup %4149 }
 0x6f3   :  { %v1941_v54 = vmul.f32 %v4150_v49, %v4835_v25  ;;  %v2534_v25 = vld [vmem:[%s5260_s3 + $0x88] sm:$0xff] }
 0x6f4   :  { %v3899_v63 = vpack.c.bf16 %v2534_v25, %v2533_v20  ;;  %v2547_v20 = vld [vmem:[%s5260_s3 + $0xf0] sm:$0xff]  ;;  %v2548_v25 = vld [vmem:[%s5260_s3 + $0xf8] sm:$0xff] }
 0x6f5   :  { %3529 = vmatprep.mubr.msk.f32.mxu1 %vm406_vm2, %v1941_v54 }
 0x6f6   :  { %3530 = vmatmul.mubr.msk.f32.vlgmr.msra.gmra.mrb[10].mxu1 %vm406_vm2, %v1942_v55  ;;  %3901 = vmatprep.subr.msk.bf16.mxu1 %vm4254_vm1, %v3899_v63  ;;  %v4179_v55 = vld [vmem:[%s5253_s0] sm:$0xff]  ;;  %v2531_v63 = vld [vmem:[%s5260_s3 + $0x70] sm:$0xff] }
 0x707   :  { %v1928_v50 = vpop.xlane.xlu0 %1927 }
 0x708   :  { %4151 = vrcp.f32 %v1928_v50 }
 0x712   :  { %v4152_v32 = vpop.eup %4151 }
 0x713   :  { %v1944_v57 = vmul.f32 %v4152_v32, %v4880_v2  ;;  %v2518_v2 = vld [vmem:[%s5260_s3 + $0x8] sm:$0xff] }
 0x714   :  { %v3902_v5 = vpack.c.bf16 %v2518_v2, %v2517_v42  ;;  %v3941_v42 = vpack.c.bf16 %v2548_v25, %v2547_v20  ;;  %v2532_v2 = vld [vmem:[%s5260_s3 + $0x78] sm:$0xff] }
 0x716   :  { %3904 = vmatpush3.bf16.xpose.msk.msra.mxu1 %vm4254_vm1, %v3902_v5 }
 0x717   :  { %3907 = vmatprep.subr.msk.bf16.mxu1 %vm4254_vm1, %v3905_v7 }
 0x71c   :  { %v1925_v56 = vpop.xlane.xlu1 %1924 }
 0x71d   :  { %4153 = vrcp.f32 %v1925_v56 }
 0x71e   :  { %3910 = vmatpush3.bf16.xpose.msk.msra.mxu1 %vm4254_vm1, %v3908_v30  ;;  %v2779_v30 = vld [vmem:[%s5261_s4 + $0x8] sm:$0xff] }
 0x727   :  { %v4154_v33 = vpop.eup %4153 }
 0x728   :  { %v1943_v22 = vmul.f32 %v4154_v33, %v4905_v13  ;;  %v2538_v13 = vld [vmem:[%s5260_s3 + $0xa8] sm:$0xff] }
 0x729   :  { %v3911_v14 = vpack.c.bf16 %v2538_v13, %v2537_v12 }
 0x72a   :  { %3532 = vmatprep.mubr.msk.f32.mxu1 %vm406_vm2, %v1943_v22  ;;  %v2529_v22 = vld [vmem:[%s5260_s3 + $0x60] sm:$0xff] }
 0x72b   :  { %3533 = vmatmul.mubr.msk.f32.gmra.mrb[12].mxu1 %vm406_vm2, %v1944_v57  ;;  %3913 = vmatprep.subr.msk.bf16.mxu1 %vm4254_vm1, %v3911_v14 }
 0x72c   :  { %3916 = vmatpush3.bf16.xpose.msk.msra.mxu1 %vm4254_vm1, %v3914_v34 }
 0x72d   :  { %3919 = vmatprep.subr.msk.bf16.mxu1 %vm4254_vm1, %v3917_v41 }
 0x734   :  { %3922 = vmatpush3.bf16.xpose.msk.msra.mxu1 %vm4254_vm1, %v3920_v51  ;;  %v2784_v51 = vld [vmem:[%s5261_s4 + $0x30] sm:$0xff] }
 0x735   :  { %3925 = vmatprep.subr.msk.bf16.mxu1 %vm4254_vm1, %v3923_v59  ;;  %v2785_v59 = vld [vmem:[%s5261_s4 + $0x38] sm:$0xff] }
 0x78c   :  { %v3483_v16 = vpop.f32.mrb[24].mxu0 }
 0x78d   :  { %v2031_v21 = vpop.f32.mrb[25].mxu0 }
 0x794   :  { %v3486_v43 = vpop.f32.mrb[26].mxu0 }
 0x795   :  { %v2041_v19 = vpop.f32.mrb[27].mxu0 }
 0x796   :  { %3503 = vmatprep.mubr.msk.f32.mxu0 %vm406_vm2, %v2041_v19  ;;  %v2781_v19 = vld [vmem:[%s5261_s4 + $0x18] sm:$0xff] }
 0x797   :  { %3504 = vmatmul.mubr.msk.f32.vlgmr.msra.gmra.mrb[28].mxu0 %vm406_vm2, %v3486_v43 }
 0x798   :  { %3828 = vmatpush3.bf16.xpose.msk.msra.mxu0 %vm4449_vm3, %v4782_v29  ;;  %3522 = vmatprep.mubr.msk.f32.mxu0 %vm406_vm2, %v2031_v21  ;;  %v2525_v29 = vld [vmem:[%s5260_s3 + $0x40] sm:$0xff] }
 0x799   :  { %3831 = vmatprep.subr.msk.bf16.mxu0 %vm4449_vm3, %v4804_v35  ;;  %v3926_v15 = vpack.c.bf16 %v2526_v62, %v2525_v29  ;;  %v3959_v29 = vpack.c.bf16 %v2785_v59, %v2784_v51 }
 0x79b   :  { %3928 = vmatpush3.bf16.xpose.msk.msra.mxu1 %vm4254_vm1, %v3926_v15 }
 0x79c   :  { %3931 = vmatprep.subr.msk.bf16.mxu1 %vm4254_vm1, %v3929_v18 }
 0x7a0   :  { %3834 = vmatpush3.bf16.xpose.msk.msra.mxu0 %vm4449_vm3, %v4804_v35  ;;  %v2527_v35 = vld [vmem:[%s5260_s3 + $0x50] sm:$0xff] }
 0x7a1   :  { %3837 = vmatprep.subr.msk.bf16.mxu0 %vm4449_vm3, %v4818_v23  ;;  %v3932_v46 = vpack.c.bf16 %v2528_v8, %v2527_v35 }
 0x7a3   :  { %3934 = vmatpush3.bf16.xpose.msk.msra.mxu1 %vm4254_vm1, %v3932_v46 }
 0x7a8   :  { %3840 = vmatpush3.bf16.xpose.msk.msra.mxu0 %vm4449_vm3, %v4818_v23 }
 0x7a9   :  { %3843 = vmatprep.subr.msk.bf16.mxu0 %vm4449_vm3, %v4828_v24 }
 0x7ae   :  { %v3448_v48 = vpop.f32.mrb[8].mxu1 }
 0x7af   :  { %v5088_v49 = vadd.f32 %v3448_v48, %v4383_v52  ;;  %v1490_v54 = vpop.f32.mrb[9].mxu1 }
 0x7b0   :  { %v5093_v50 = vadd.f32 %v4179_v55, %v1490_v54  ;;  %3846 = vmatpush3.bf16.xpose.msk.msra.mxu0 %vm4449_vm3, %v4828_v24  ;;  %v2545_v24 = vld [vmem:[%s5260_s3 + $0xe0] sm:$0xff] }
 0x7b1   :  { %3853 = vmatprep.subr.msk.bf16.mxu0 %vm4449_vm3, %v4842_v37  ;;  %v2486_v23 = vmul.f32 %v5088_v49, %v5088_v49 }
 0x7b2   :  { %v2485_v52 = vmul.f32 %v5093_v50, %v5093_v50 }
 0x7b3   :  { %v2492_v56 = vsel %vm46_vm0, %v2486_v23, 0.0 }
 0x7b4   :  { %2493 = vadd.xlane.f32.xlu1 %v2492_v56  ;;  %v2489_v32 = vsel %vm46_vm0, %v2485_v52, 0.0 }
 0x7b5   :  { %2490 = vadd.xlane.f32.xlu0 %v2489_v32 }
 0x7b7   :  { %3523 = vmatmul.mubr.msk.f32.vlgmr.msra.gmra.mrb[28].mxu0 %vm406_vm2, %v3483_v16 }
 0x7b8   :  { %3856 = vmatpush3.bf16.xpose.msk.msra.mxu0 %vm4449_vm3, %v4842_v37  ;;  %v2546_v37 = vld [vmem:[%s5260_s3 + $0xe8] sm:$0xff] }
 0x7b9   :  { %3859 = vmatprep.subr.msk.bf16.mxu0 %vm4449_vm3, %v4850_v47  ;;  %v3935_v33 = vpack.c.bf16 %v2546_v37, %v2545_v24 }
 0x7bb   :  { %3937 = vmatprep.subr.msk.bf16.mxu1 %vm4254_vm1, %v3935_v33 }
 0x7c0   :  { %3862 = vmatpush3.bf16.xpose.msk.msra.mxu0 %vm4449_vm3, %v4850_v47  ;;  %v2530_v47 = vld [vmem:[%s5260_s3 + $0x68] sm:$0xff] }
 0x7c1   :  { %3865 = vmatprep.subr.msk.bf16.mxu0 %vm4449_vm3, %v4862_v58  ;;  %v3938_v57 = vpack.c.bf16 %v2530_v47, %v2529_v22 }
 0x7c3   :  { %3940 = vmatpush3.bf16.xpose.msk.msra.mxu1 %vm4254_vm1, %v3938_v57 }
 0x7c4   :  { %3943 = vmatprep.subr.msk.bf16.mxu1 %vm4254_vm1, %v3941_v42 }
 0x7c8   :  { %3868 = vmatpush3.bf16.xpose.msk.msra.mxu0 %vm4449_vm3, %v4862_v58  ;;  %v3944_v58 = vpack.c.bf16 %v2532_v2, %v2531_v63 }
 0x7c9   :  { %3871 = vmatprep.subr.msk.bf16.mxu0 %vm4449_vm3, %v4872_v61  ;;  %v3531_v1 = vpop.f32.mrb[10].mxu1 }
 0x7ca   :  { %v2296_v3 = vpop.f32.mrb[11].mxu1 }
 0x7cb   :  { %3551 = vmatprep.mubr.msk.f32.mxu0 %vm406_vm2, %v2296_v3  ;;  %3946 = vmatpush3.bf16.xpose.msk.msra.mxu1 %vm4254_vm1, %v3944_v58 }
 0x7d0   :  { %3874 = vmatpush3.bf16.xpose.msk.msra.mxu0 %vm4449_vm3, %v4872_v61 }
 0x7d1   :  { %3877 = vmatprep.subr.msk.bf16.mxu0 %vm4449_vm3, %v4885_v6 }
 0x7d7   :  { %3552 = vmatmul.mubr.msk.f32.vlgmr.msra.gmra.mrb[28].mxu0 %vm406_vm2, %v3531_v1 }
 0x7d8   :  { %3880 = vmatpush3.bf16.xpose.msk.msra.mxu0 %vm4449_vm3, %v4885_v6 }
 0x7d9   :  { %3883 = vmatprep.subr.msk.bf16.mxu0 %vm4449_vm3, %v4893_v40 }
 0x7e0   :  { %3886 = vmatpush3.bf16.xpose.msk.msra.mxu0 %vm4449_vm3, %v4893_v40 }
 0x7e1   :  { %3889 = vmatprep.subr.msk.bf16.mxu0 %vm4449_vm3, %v4915_v26 }
 0x7e8   :  { %3892 = vmatpush3.bf16.xpose.msk.msra.mxu0 %vm4449_vm3, %v4915_v26 }
 0x7e9   :  { %3895 = vmatprep.subr.msk.bf16.mxu0 %vm4449_vm3, %v4946_v45 }
 0x7f0   :  { %3898 = vmatpush3.bf16.xpose.msk.msra.mxu0 %vm4449_vm3, %v4946_v45  ;;  %v2778_v45 = vld [vmem:[%s5261_s4] sm:$0xff] }
 0x7f1   :  { %v3947_v14 = vpack.c.bf16 %v2779_v30, %v2778_v45 }
 0x7f3   :  { %3948 = vmatprep.subr.bf16.mxu1 %v3947_v14 }
 0x7fe   :  { %v3534_v4 = vpop.f32.mrb[12].mxu1 }
 0x7ff   :  { %v2306_v61 = vpop.f32.mrb[13].mxu1 }
 0x800   :  { %3570 = vmatprep.mubr.msk.f32.mxu0 %vm406_vm2, %v2306_v61 }
 0x801   :  { %3571 = vmatmul.mubr.msk.f32.vlgmr.msra.gmra.mrb[28].mxu0 %vm406_vm2, %v3534_v4 }
 0x841   :  { %v2494_v6 = vpop.xlane.xlu1 %2493 }
 0x842   :  { %v2502_v40 = vmul.f32 0.015625, %v2494_v6  ;;  %v2491_v5 = vpop.xlane.xlu0 %2490 }
 0x843   :  { %v2501_v7 = vmul.f32 0.015625, %v2491_v5 }
 0x844   :  { %v2506_v9 = vadd.f32 1e-05, %v2502_v40 }
 0x845   :  { %v2505_v26 = vadd.f32 1e-05, %v2501_v7 }
 0x846   :  { %4155 = vrsqrt.f32 %v2506_v9 }
 0x847   :  { %4157 = vrsqrt.f32 %v2505_v26 }
 0x850   :  { %v4156_v10 = vpop.eup %4155 }
 0x851   :  { %v4158_v12 = vpop.eup %4157  ;;  %v2514_v39 = vmul.f32 %v4156_v10, %v5088_v49 }
 0x852   :  { %v2513_v13 = vmul.f32 %v4158_v12, %v5093_v50 }
 0x854   :  { %3305 = vmatprep.mubr.msk.f32.mxu1 %vm46_vm0, %v2513_v13 }
 0x855   :  { %3306 = vmatmul.mubr.msk.f32.vlgmr.msra.gmra.mrb[14].mxu1 %vm46_vm0, %v2513_v13 }
 0x856   :  { %3307 = vmatprep.mubr.msk.f32.mxu1 %vm46_vm0, %v2514_v39  ;;  %3950 = vmatpush3.bf16.xpose.msra.mxu1 %v3947_v14 }
 0x859   :  { %3308 = vmatmul.mubr.msk.f32.gmra.mrb[16].mxu1 %vm46_vm0, %v2514_v39 }
 0x8d4   :  { %v3572_v16 = vpop.f32.mrb[28].mxu0 }
 0x8d5   :  { %v5202_v21 = vadd.f32 %v3572_v16, %v4463_v44  ;;  %v2470_v53 = vpop.f32.mrb[29].mxu0  ;;  %v2780_v44 = vld [vmem:[%s5261_s4 + $0x10] sm:$0xff] }
 0x8d6   :  { %v5207_v17 = vadd.f32 %v4180_v28, %v2470_v53  ;;  %v3951_v60 = vpack.c.bf16 %v2781_v19, %v2780_v44 }
 0x8d7   :  { %v2488_v31 = vmul.f32 %v5202_v21, %v5202_v21 }
 0x8d8   :  { %v2487_v34 = vmul.f32 %v5207_v17, %v5207_v17  ;;  %3952 = vmatprep.subr.bf16.mxu1 %v3951_v60 }
 0x8d9   :  { %v2498_v41 = vsel %vm46_vm0, %v2488_v31, 0.0  ;;  %3954 = vmatpush3.bf16.xpose.msra.mxu1 %v3951_v60 }
 0x8da   :  { %2499 = vadd.xlane.f32.xlu1 %v2498_v41  ;;  %v2495_v43 = vsel %vm46_vm0, %v2487_v34, 0.0  ;;  %3956 = vmatprep.subr.bf16.mxu1 %v3955_v36 }
 0x8db   :  { %2496 = vadd.xlane.f32.xlu0 %v2495_v43 }
 0x8e1   :  { %3958 = vmatpush3.bf16.xpose.msra.mxu1 %v3955_v36 }
 0x8e2   :  { %3960 = vmatprep.subr.bf16.mxu1 %v3959_v29 }
 0x8e9   :  { %3962 = vmatpush3.bf16.xpose.msra.mxu1 %v3959_v29 }
 0x928   :  { %v2723_v62 = vpop.f32.mrb[14].mxu1 }
 0x929   :  { %v3092_v38 = vmul.f32 -1.442695, %v2723_v62  ;;  %v2725_v11 = vpop.f32.mrb[15].mxu1 }
 0x92b   :  { %4159 = vpow2.f32 %v3092_v38 }
 0x92c   :  { %v2729_v15 = vpop.f32.mrb[16].mxu1 }
 0x92d   :  { %v3093_v18 = vmul.f32 -1.442695, %v2729_v15  ;;  %v2731_v35 = vpop.f32.mrb[17].mxu1 }
 0x92f   :  { %4161 = vpow2.f32 %v3093_v18 }
 0x935   :  { %v4160_v8 = vpop.eup %4159 }
 0x936   :  { %v2758_v46 = vadd.f32 1.0, %v4160_v8 }
 0x938   :  { %4163 = vrcp.f32 %v2758_v46 }
 0x939   :  { %v4162_v48 = vpop.eup %4161 }
 0x93a   :  { %v2759_v54 = vadd.f32 1.0, %v4162_v48 }
 0x93c   :  { %4165 = vrcp.f32 %v2759_v54 }
 0x942   :  { %v4164_v55 = vpop.eup %4163 }
 0x943   :  { %v2770_v23 = vmul.f32 %v4164_v55, %v2723_v62 }
 0x945   :  { %v2774_v52 = vmul.f32 %v2770_v23, %v2725_v11 }
 0x946   :  { %v4166_v56 = vpop.eup %4165 }
 0x947   :  { %v2771_v32 = vmul.f32 %v4166_v56, %v2729_v15 }
 0x949   :  { %v2775_v24 = vmul.f32 %v2771_v32, %v2731_v35 }
 0x967   :  { %v2500_v37 = vpop.xlane.xlu1 %2499 }
 0x968   :  { %v2504_v33 = vmul.f32 0.015625, %v2500_v37  ;;  %v2497_v22 = vpop.xlane.xlu0 %2496 }
 0x969   :  { %v2503_v47 = vmul.f32 0.015625, %v2497_v22 }
 0x96a   :  { %v2508_v57 = vadd.f32 1e-05, %v2504_v33 }
 0x96b   :  { %v2507_v20 = vadd.f32 1e-05, %v2503_v47 }
 0x96c   :  { %4167 = vrsqrt.f32 %v2508_v57 }
 0x96d   :  { %4169 = vrsqrt.f32 %v2507_v20 }
 0x976   :  { %v4168_v25 = vpop.eup %4167 }
 0x977   :  { %v4170_v42 = vpop.eup %4169  ;;  %v2516_v2 = vmul.f32 %v4168_v25, %v5202_v21 }
 0x978   :  { %v2515_v63 = vmul.f32 %v4170_v42, %v5207_v17 }
 0x97a   :  { %3309 = vmatprep.mubr.msk.f32.mxu1 %vm46_vm0, %v2515_v63 }
 0x97b   :  { %3310 = vmatmul.mubr.msk.f32.gmra.mrb[18].mxu1 %vm46_vm0, %v2515_v63 }
 0x97c   :  { %3311 = vmatprep.mubr.msk.f32.mxu1 %vm46_vm0, %v2516_v2 }
 0x97f   :  { %3312 = vmatmul.mubr.msk.f32.gmra.mrb[20].mxu1 %vm46_vm0, %v2516_v2 }
 0x980   :  { %3589 = vmatprep.mubr.f32.mxu1 %v2774_v52 }
 0x983   :  { %3590 = vmatmul.mubr.f32.vlgmr.msra.gmra.mrb[22].mxu1 %v2775_v24 }
 0xa4e   :  { %v2735_v1 = vpop.f32.mrb[18].mxu1 }
 0xa4f   :  { %v3094_v3 = vmul.f32 -1.442695, %v2735_v1  ;;  %v2737_v58 = vpop.f32.mrb[19].mxu1 }
 0xa51   :  { %4171 = vpow2.f32 %v3094_v3 }
 0xa52   :  { %v2741_v4 = vpop.f32.mrb[20].mxu1 }
 0xa53   :  { %v3095_v61 = vmul.f32 -1.442695, %v2741_v4  ;;  %v2743_v6 = vpop.f32.mrb[21].mxu1 }
 0xa55   :  { %4173 = vpow2.f32 %v3095_v61 }
 0xa56   :  { %v3591_v40 = vpop.f32.mrb[22].mxu1 }
 0xa57   :  { %v2872_v5 = vadd.f32 %v3591_v40, %v5088_v49  ;;  %v2852_v7 = vpop.f32.mrb[23].mxu1 }
 0xa58   :  { %v2871_v53 = vadd.f32 %v2852_v7, %v5093_v50 }
 0xa59   :  { %2876 = vrot.lane.b32.xlu0 %v2872_v5, %s4181_s15 }
 0xa5b   :  { %v4172_v9 = vpop.eup %4171 }
 0xa5c   :  { %v2760_v26 = vadd.f32 1.0, %v4172_v9 }
 0xa5e   :  { %4175 = vrcp.f32 %v2760_v26 }
 0xa5f   :  { %v4174_v10 = vpop.eup %4173 }
 0xa60   :  { %v2761_v12 = vadd.f32 1.0, %v4174_v10 }
 0xa62   :  { %4177 = vrcp.f32 %v2761_v12 }
 0xa68   :  { %v4176_v13 = vpop.eup %4175 }
 0xa69   :  { %v2772_v39 = vmul.f32 %v4176_v13, %v2735_v1 }
 0xa6b   :  { %v2776_v45 = vmul.f32 %v2772_v39, %v2737_v58 }
 0xa6c   :  { %v4178_v30 = vpop.eup %4177 }
 0xa6d   :  { %v2773_v14 = vmul.f32 %v4178_v30, %v2741_v4  ;;  %3592 = vmatprep.mubr.f32.mxu1 %v2776_v45 }
 0xa6f   :  { %v2777_v16 = vmul.f32 %v2773_v14, %v2743_v6 }
 0xa71   :  { %3593 = vmatmul.mubr.f32.gmra.mrb[24].mxu1 %v2777_v16 }
 0xacb   :  { %v2877_v49 = vpop.permute.xlu0 %2876 }
 0xacc   :  { %v2879_v28 = vsel %vm46_vm0, %v2871_v53, %v2877_v49 }
 0xacd   :  { %2880 = vst [vmem:[%s5262_s9] sm:$0xff] %v2879_v28 }
 0xb44   :  { %v3594_v31 = vpop.f32.mrb[24].mxu1 }
 0xb45   :  { %v2874_v34 = vadd.f32 %v3594_v31, %v5202_v21  ;;  %v2862_v41 = vpop.f32.mrb[25].mxu1 }
 0xb46   :  { %v2873_v43 = vadd.f32 %v2862_v41, %v5207_v17 }
 0xb47   :  { %2882 = vrot.lane.b32.xlu1 %v2874_v34, %s4181_s15 }
 0xbb9   :  { %v2883_v44 = vpop.permute.xlu1 %2882 }
 0xbba   :  { %v2885_v19 = vsel %vm46_vm0, %v2873_v43, %v2883_v44 }
 0xbbb   :  { %3096 = vst [vmem:[%s5262_s9 + $0x8] sm:$0xff] %v2885_v19 }

</bundles_post_ra>
